<compile_context>
chip_gen: v7x
topology: tpu7x:2x2x1
jax: 0.10.0
libtpu: 0.0.40
codegen_flags: <defaults>
</compile_context>

<pallas_src>
import functools

import jax
import jax.numpy as jnp
from jax import lax
from jax.experimental import pallas as pl
from jax.experimental.pallas import tpu as pltpu


def _round_up(x, m):
    return (x + m - 1) // m * m


# ---------------------------------------------------------------------------
# Pallas matmul: bf16 inputs, f32 accumulator, (M, N, K) grid.
# ---------------------------------------------------------------------------
def _matmul_kernel(a_ref, b_ref, o_ref, acc_ref):
    @pl.when(pl.program_id(2) == 0)
    def _():
        acc_ref[...] = jnp.zeros_like(acc_ref)

    acc_ref[...] += jnp.dot(a_ref[...], b_ref[...],
                            preferred_element_type=jnp.float32)

    @pl.when(pl.program_id(2) == pl.num_programs(2) - 1)
    def _():
        o_ref[...] = acc_ref[...].astype(o_ref.dtype)


def pallas_matmul(a, b):
    """(M, K) @ (K, N) -> (M, N) f32.  A/B cast to bf16, f32 accumulation.

    M, N, K are zero-padded up to tile multiples (padding contributes zero to
    the dot product); the result is sliced back to (M, N).
    """
    M, K = a.shape
    K2, N = b.shape
    assert K == K2

    tm = 512 if M >= 512 else _round_up(M, 128)
    tn = 256 if (N >= 256 and N % 256 == 0) else 128
    tk = 512 if K >= 512 else _round_up(K, 128)

    Mp, Np, Kp = _round_up(M, tm), _round_up(N, tn), _round_up(K, tk)

    a_p = jnp.pad(a, ((0, Mp - M), (0, Kp - K))).astype(jnp.bfloat16)
    b_p = jnp.pad(b, ((0, Kp - K), (0, Np - N))).astype(jnp.bfloat16)

    out = pl.pallas_call(
        _matmul_kernel,
        out_shape=jax.ShapeDtypeStruct((Mp, Np), jnp.float32),
        grid_spec=pltpu.PrefetchScalarGridSpec(
            num_scalar_prefetch=0,
            grid=(Mp // tm, Np // tn, Kp // tk),
            in_specs=[
                pl.BlockSpec((tm, tk), lambda i, j, k: (i, k)),
                pl.BlockSpec((tk, tn), lambda i, j, k: (k, j)),
            ],
            out_specs=pl.BlockSpec((tm, tn), lambda i, j, k: (i, j)),
            scratch_shapes=[pltpu.VMEM((tm, tn), jnp.float32)]),
        compiler_params=pltpu.CompilerParams(
            dimension_semantics=("parallel", "parallel", "arbitrary")),
    )(a_p, b_p)
    return out[:M, :N]


# ---------------------------------------------------------------------------
# InstanceNorm3d + ReLU: tiled sum/sumsq reduction, then normalize+ReLU pass.
# ---------------------------------------------------------------------------
def _in_stats_kernel(x_ref, stats_ref):
    x = x_ref[...]                                        # (ts, C) f32
    ssum = jnp.sum(x, axis=0, keepdims=True)              # (1, C)
    ssq = jnp.sum(x * x, axis=0, keepdims=True)           # (1, C)
    part = jnp.concatenate([ssum, ssq], axis=0)           # (2, C)

    @pl.when(pl.program_id(1) == 0)
    def _():
        stats_ref[...] = part

    @pl.when(pl.program_id(1) != 0)
    def _():
        stats_ref[...] = stats_ref[...] + part


def _in_norm_relu_kernel(stats_ref, x_ref, o_ref, *, inv_s, eps):
    stats = stats_ref[...]                                # (2, C)
    mean = stats[0:1, :] * inv_s
    var = stats[1:2, :] * inv_s - mean * mean             # biased (PyTorch IN)
    scale = lax.rsqrt(var + eps)                          # EUP, effectively free
    shift = -mean * scale
    o_ref[...] = jnp.maximum(x_ref[...] * scale + shift, 0.0)   # FMA + ReLU


def pallas_instancenorm_relu(x, eps=1e-5):
    """x: (N, S, C) f32; normalize over S per (n, c), then ReLU."""
    Nb, S, C = x.shape
    ts = min(1024, _round_up(S, 8))
    Sp = _round_up(S, ts)
    xp = jnp.pad(x, ((0, 0), (0, Sp - S), (0, 0)))        # zero rows: sums unaffected

    stats = pl.pallas_call(
        _in_stats_kernel,
        out_shape=jax.ShapeDtypeStruct((Nb, 2, C), jnp.float32),
        grid=(Nb, Sp // ts),
        in_specs=[pl.BlockSpec((None, ts, C), lambda n, s: (n, s, 0))],
        out_specs=pl.BlockSpec((None, 2, C), lambda n, s: (n, 0, 0)),
        compiler_params=pltpu.CompilerParams(
            dimension_semantics=("parallel", "arbitrary")),
    )(xp)

    y = pl.pallas_call(
        functools.partial(_in_norm_relu_kernel, inv_s=1.0 / S, eps=eps),
        out_shape=jax.ShapeDtypeStruct((Nb, Sp, C), jnp.float32),
        grid=(Nb, Sp // ts),
        in_specs=[
            pl.BlockSpec((None, 2, C), lambda n, s: (n, 0, 0)),
            pl.BlockSpec((None, ts, C), lambda n, s: (n, s, 0)),
        ],
        out_specs=pl.BlockSpec((None, ts, C), lambda n, s: (n, s, 0)),
        compiler_params=pltpu.CompilerParams(
            dimension_semantics=("parallel", "parallel")),
    )(stats, xp)
    return y[:, :S, :]


# ---------------------------------------------------------------------------
# Glue: im2col for 3-D convolution (channels-last, bf16 patches)
# ---------------------------------------------------------------------------
def im2col3d(x, k, stride, pad):
    """x: (N, D, H, W, C) -> ((N*Do*Ho*Wo, k^3*C), (N, Do, Ho, Wo))."""
    N, D, H, W, C = x.shape
    xp = jnp.pad(x, ((0, 0), (pad, pad), (pad, pad), (pad, pad), (0, 0)))
    Do = (D + 2 * pad - k) // stride + 1
    Ho = (H + 2 * pad - k) // stride + 1
    Wo = (W + 2 * pad - k) // stride + 1
    cols = []
    for kd in range(k):
        for kh in range(k):
            for kw in range(k):
                sl = xp[:,
                        kd:kd + (Do - 1) * stride + 1:stride,
                        kh:kh + (Ho - 1) * stride + 1:stride,
                        kw:kw + (Wo - 1) * stride + 1:stride, :]
                cols.append(sl)
    patches = jnp.stack(cols, axis=-2)                    # (N, Do, Ho, Wo, k^3, C)
    return patches.reshape(N * Do * Ho * Wo, k ** 3 * C), (N, Do, Ho, Wo)


# ---------------------------------------------------------------------------
# UD forward (normalize=True, dropout=0.0 as in the module defaults)
# ---------------------------------------------------------------------------
@jax.jit
def ud_forward(x_ncdhw, w1, w2):
    """x_ncdhw: (N, Cin, D, H, W); w1: (Cout, Cin, 3,3,3); w2: (Cout, Cout, 5,5,5)."""
    cout = w1.shape[0]
    cp = _round_up(cout, 128)                             # lane-dense channel pad

    x = jnp.transpose(x_ncdhw, (0, 2, 3, 4, 1)).astype(jnp.bfloat16)   # NDHWC bf16

    # Conv3d(in, out, kernel=3, stride=1, padding=1, bias=False)
    p1, (n, d1, h1, wo1) = im2col3d(x, 3, 1, 1)
    w1f = jnp.transpose(w1, (2, 3, 4, 1, 0)).reshape(-1, cout).astype(jnp.bfloat16)
    y1 = pallas_matmul(p1, w1f)                           # (N*d1*h1*wo1, cout) f32
    y1 = y1.reshape(n, d1, h1, wo1, cout).astype(jnp.bfloat16)

    # Conv3d(out, out, kernel=5, stride=2, padding=2, bias=False)
    # Weight columns are pre-padded to cp so the matmul output stays lane-dense;
    # padded channels are identically zero and are sliced off at the very end.
    p2, (n, d2, h2, wo2) = im2col3d(y1, 5, 2, 2)
    w2f = jnp.transpose(w2, (2, 3, 4, 1, 0)).reshape(-1, cout).astype(jnp.bfloat16)
    w2f = jnp.pad(w2f, ((0, 0), (0, cp - cout)))
    y2 = pallas_matmul(p2, w2f)                           # (N*d2*h2*wo2, cp) f32
    y2 = y2.reshape(n, d2 * h2 * wo2, cp)

    # InstanceNorm3d(out) + ReLU (tiled Pallas kernels). dropout=0.0 -> identity.
    y3 = pallas_instancenorm_relu(y2)
    y3 = y3.reshape(n, d2, h2, wo2, cp)[..., :cout]
    return jnp.transpose(y3, (0, 4, 1, 2, 3))             # back to NCDHW


# ---------------------------------------------------------------------------
# Precision-matched JAX reference (bf16 conv inputs, f32 accumulation)
# ---------------------------------------------------------------------------
def ud_reference(x_ncdhw, w1, w2, eps=1e-5):
    x = jnp.transpose(x_ncdhw, (0, 2, 3, 4, 1)).astype(jnp.bfloat16)
    k1 = jnp.transpose(w1, (2, 3, 4, 1, 0)).astype(jnp.bfloat16)
    k2 = jnp.transpose(w2, (2, 3, 4, 1, 0)).astype(jnp.bfloat16)
    dn = ("NDHWC", "DHWIO", "NDHWC")
    y = lax.conv_general_dilated(x, k1, (1, 1, 1), [(1, 1)] * 3,
                                 dimension_numbers=dn,
                                 preferred_element_type=jnp.float32)
    y = lax.conv_general_dilated(y.astype(jnp.bfloat16), k2, (2, 2, 2),
                                 [(2, 2)] * 3, dimension_numbers=dn,
                                 preferred_element_type=jnp.float32)
    mean = jnp.mean(y, axis=(1, 2, 3), keepdims=True)
    var = jnp.mean((y - mean) ** 2, axis=(1, 2, 3), keepdims=True)
    y = jnp.maximum((y - mean) * lax.rsqrt(var + eps), 0.0)
    return jnp.transpose(y, (0, 4, 1, 2, 3))


if __name__ == "__main__":
    N, Cin, Cout, D, H, W = 2, 4, 8, 8, 8, 8
    key = jax.random.PRNGKey(0)
    kx, kw1, kw2 = jax.random.split(key, 3)

    x = jax.random.normal(kx, (N, Cin, D, H, W), jnp.float32)
    # Deterministic synthetic conv weights (PyTorch layout: OIDHW), kaiming-ish scale.
    w1 = jax.random.normal(kw1, (Cout, Cin, 3, 3, 3), jnp.float32) / (Cin * 27) ** 0.5
    w2 = jax.random.normal(kw2, (Cout, Cout, 5, 5, 5), jnp.float32) / (Cout * 125) ** 0.5

    out = jax.block_until_ready(ud_forward(x, w1, w2))
    ref = jax.block_until_ready(ud_reference(x, w1, w2))

    assert out.shape == (N, Cout, D // 2, H // 2, W // 2), out.shape
    if not jnp.allclose(out, ref, rtol=1e-2, atol=1e-2):
        raise AssertionError("Pallas UD output mismatch vs JAX reference")
    print("KERNEL_OK")
</pallas_src>

<mosaic_0001>
module attributes {stable_mosaic.version = 11 : i64} {
  func.func @_matmul_kernel(%arg0: i32, %arg1: i32, %arg2: i32, %arg3: memref<512x128xbf16, #tpu.memory_space<vmem>>, %arg4: memref<128x128xbf16, #tpu.memory_space<vmem>>, %arg5: memref<512x128xf32, #tpu.memory_space<vmem>>, %arg6: memref<512x128xf32, #tpu.memory_space<vmem>>) attributes {dimension_semantics = [#tpu.dimension_semantics<parallel>, #tpu.dimension_semantics<parallel>, #tpu.dimension_semantics<arbitrary>], iteration_bounds = array<i64: 2, 1, 1>, scalar_prefetch = 0 : i64, scratch_operands = 1 : i64, tpu.core_type = #tpu.core_type<tc>, window_params = [{transform_indices = @transform_0, window_bounds = array<i64: 512, 128>}, {transform_indices = @transform_1, window_bounds = array<i64: 128, 128>}, {transform_indices = @transform_2, window_bounds = array<i64: 512, 128>}]} {
    %c0_i32 = arith.constant 0 : i32
    %0 = arith.cmpi eq, %arg2, %c0_i32 : i32
    %1 = arith.extui %0 : i1 to i32
    %c0_i32_0 = arith.constant 0 : i32
    %2 = arith.cmpi ne, %1, %c0_i32_0 : i32
    scf.if %2 {
      %cst_10 = arith.constant 0.000000e+00 : f32
      %12 = vector.broadcast %cst_10 : f32 to vector<512x128xf32>
      %c0_11 = arith.constant 0 : index
      %c0_12 = arith.constant 0 : index
      %13 = vector.load %arg6[%c0_11, %c0_12] : memref<512x128xf32, #tpu.memory_space<vmem>>, vector<512x128xf32>
      tpu.vector_store %arg6[%c0_11, %c0_12], %12 {strides = array<i32>} : memref<512x128xf32, #tpu.memory_space<vmem>>, vector<512x128xf32>,
    } else {
    }
    %c0 = arith.constant 0 : index
    %c0_1 = arith.constant 0 : index
    %3 = vector.load %arg6[%c0, %c0_1] : memref<512x128xf32, #tpu.memory_space<vmem>>, vector<512x128xf32>
    %c0_2 = arith.constant 0 : index
    %c0_3 = arith.constant 0 : index
    %4 = vector.load %arg3[%c0_2, %c0_3] : memref<512x128xbf16, #tpu.memory_space<vmem>>, vector<512x128xbf16>
    %c0_4 = arith.constant 0 : index
    %c0_5 = arith.constant 0 : index
    %5 = vector.load %arg4[%c0_4, %c0_5] : memref<128x128xbf16, #tpu.memory_space<vmem>>, vector<128x128xbf16>
    %cst = arith.constant dense<0.000000e+00> : vector<512x128xf32>
    %6 = tpu.matmul %4, %5, %cst {dimension_numbers = #tpu.dot_dimension_numbers<[1], [0], [0], [1], [0, 0, 1, 1], [], []>} : vector<512x128xbf16>, vector<128x128xbf16>, vector<512x128xf32> -> vector<512x128xf32>
    %7 = arith.addf %3, %6 : vector<512x128xf32>
    %c0_6 = arith.constant 0 : index
    %c0_7 = arith.constant 0 : index
    %8 = vector.load %arg6[%c0_6, %c0_7] : memref<512x128xf32, #tpu.memory_space<vmem>>, vector<512x128xf32>
    tpu.vector_store %arg6[%c0_6, %c0_7], %7 {strides = array<i32>} : memref<512x128xf32, #tpu.memory_space<vmem>>, vector<512x128xf32>,
    %c0_i32_8 = arith.constant 0 : i32
    %9 = arith.cmpi eq, %arg2, %c0_i32_8 : i32
    %10 = arith.extui %9 : i1 to i32
    %c0_i32_9 = arith.constant 0 : i32
    %11 = arith.cmpi ne, %10, %c0_i32_9 : i32
    scf.if %11 {
      %c0_10 = arith.constant 0 : index
      %c0_11 = arith.constant 0 : index
      %12 = vector.load %arg6[%c0_10, %c0_11] : memref<512x128xf32, #tpu.memory_space<vmem>>, vector<512x128xf32>
      %c0_12 = arith.constant 0 : index
      %c0_13 = arith.constant 0 : index
      %13 = vector.load %arg5[%c0_12, %c0_13] : memref<512x128xf32, #tpu.memory_space<vmem>>, vector<512x128xf32>
      tpu.vector_store %arg5[%c0_12, %c0_13], %12 {strides = array<i32>} : memref<512x128xf32, #tpu.memory_space<vmem>>, vector<512x128xf32>,
    } else {
    }
    return
  }
  func.func @transform_0(%arg0: i32, %arg1: i32, %arg2: i32) -> (i32, i32) {
    %c0_i32 = arith.constant 0 : i32
    return %arg0, %arg2 : i32, i32
  }
  func.func @transform_1(%arg0: i32, %arg1: i32, %arg2: i32) -> (i32, i32) {
    %c0_i32 = arith.constant 0 : i32
    return %arg2, %arg1 : i32, i32
  }
  func.func @transform_2(%arg0: i32, %arg1: i32, %arg2: i32) -> (i32, i32) {
    %c0_i32 = arith.constant 0 : i32
    return %arg0, %arg1 : i32, i32
  }
}

module attributes {stable_mosaic.version = 11 : i64} {
  func.func @_matmul_kernel(%arg0: i32, %arg1: i32, %arg2: i32, %arg3: memref<128x512xbf16, #tpu.memory_space<vmem>>, %arg4: memref<512x128xbf16, #tpu.memory_space<vmem>>, %arg5: memref<128x128xf32, #tpu.memory_space<vmem>>, %arg6: memref<128x128xf32, #tpu.memory_space<vmem>>) attributes {dimension_semantics = [#tpu.dimension_semantics<parallel>, #tpu.dimension_semantics<parallel>, #tpu.dimension_semantics<arbitrary>], iteration_bounds = array<i64: 1, 1, 2>, scalar_prefetch = 0 : i64, scratch_operands = 1 : i64, tpu.core_type = #tpu.core_type<tc>, window_params = [{transform_indices = @transform_0, window_bounds = array<i64: 128, 512>}, {transform_indices = @transform_1, window_bounds = array<i64: 512, 128>}, {transform_indices = @transform_2, window_bounds = array<i64: 128, 128>}]} {
    %c0_i32 = arith.constant 0 : i32
    %0 = arith.cmpi eq, %arg2, %c0_i32 : i32
    %1 = arith.extui %0 : i1 to i32
    %c0_i32_0 = arith.constant 0 : i32
    %2 = arith.cmpi ne, %1, %c0_i32_0 : i32
    scf.if %2 {
      %cst_9 = arith.constant 0.000000e+00 : f32
      %12 = vector.broadcast %cst_9 : f32 to vector<128x128xf32>
      %c0_10 = arith.constant 0 : index
      %c0_11 = arith.constant 0 : index
      %13 = vector.load %arg6[%c0_10, %c0_11] : memref<128x128xf32, #tpu.memory_space<vmem>>, vector<128x128xf32>
      tpu.vector_store %arg6[%c0_10, %c0_11], %12 {strides = array<i32>} : memref<128x128xf32, #tpu.memory_space<vmem>>, vector<128x128xf32>,
    } else {
    }
    %c0 = arith.constant 0 : index
    %c0_1 = arith.constant 0 : index
    %3 = vector.load %arg6[%c0, %c0_1] : memref<128x128xf32, #tpu.memory_space<vmem>>, vector<128x128xf32>
    %c0_2 = arith.constant 0 : index
    %c0_3 = arith.constant 0 : index
    %4 = vector.load %arg3[%c0_2, %c0_3] : memref<128x512xbf16, #tpu.memory_space<vmem>>, vector<128x512xbf16>
    %c0_4 = arith.constant 0 : index
    %c0_5 = arith.constant 0 : index
    %5 = vector.load %arg4[%c0_4, %c0_5] : memref<512x128xbf16, #tpu.memory_space<vmem>>, vector<512x128xbf16>
    %cst = arith.constant dense<0.000000e+00> : vector<128x128xf32>
    %6 = tpu.matmul %4, %5, %cst {dimension_numbers = #tpu.dot_dimension_numbers<[1], [0], [0], [1], [0, 0, 1, 1], [], []>} : vector<128x512xbf16>, vector<512x128xbf16>, vector<128x128xf32> -> vector<128x128xf32>
    %7 = arith.addf %3, %6 : vector<128x128xf32>
    %c0_6 = arith.constant 0 : index
    %c0_7 = arith.constant 0 : index
    %8 = vector.load %arg6[%c0_6, %c0_7] : memref<128x128xf32, #tpu.memory_space<vmem>>, vector<128x128xf32>
    tpu.vector_store %arg6[%c0_6, %c0_7], %7 {strides = array<i32>} : memref<128x128xf32, #tpu.memory_space<vmem>>, vector<128x128xf32>,
    %c1_i32 = arith.constant 1 : i32
    %9 = arith.cmpi eq, %arg2, %c1_i32 : i32
    %10 = arith.extui %9 : i1 to i32
    %c0_i32_8 = arith.constant 0 : i32
    %11 = arith.cmpi ne, %10, %c0_i32_8 : i32
    scf.if %11 {
      %c0_9 = arith.constant 0 : index
      %c0_10 = arith.constant 0 : index
      %12 = vector.load %arg6[%c0_9, %c0_10] : memref<128x128xf32, #tpu.memory_space<vmem>>, vector<128x128xf32>
      %c0_11 = arith.constant 0 : index
      %c0_12 = arith.constant 0 : index
      %13 = vector.load %arg5[%c0_11, %c0_12] : memref<128x128xf32, #tpu.memory_space<vmem>>, vector<128x128xf32>
      tpu.vector_store %arg5[%c0_11, %c0_12], %12 {strides = array<i32>} : memref<128x128xf32, #tpu.memory_space<vmem>>, vector<128x128xf32>,
    } else {
    }
    return
  }
  func.func @transform_0(%arg0: i32, %arg1: i32, %arg2: i32) -> (i32, i32) {
    %c0_i32 = arith.constant 0 : i32
    return %arg0, %arg2 : i32, i32
  }
  func.func @transform_1(%arg0: i32, %arg1: i32, %arg2: i32) -> (i32, i32) {
    %c0_i32 = arith.constant 0 : i32
    return %arg2, %arg1 : i32, i32
  }
  func.func @transform_2(%arg0: i32, %arg1: i32, %arg2: i32) -> (i32, i32) {
    %c0_i32 = arith.constant 0 : i32
    return %arg0, %arg1 : i32, i32
  }
}

module attributes {stable_mosaic.version = 11 : i64} {
  func.func @_in_stats_kernel(%arg0: i32, %arg1: i32, %arg2: memref<1x64x128xf32, #tpu.memory_space<vmem>>, %arg3: memref<1x2x128xf32, #tpu.memory_space<vmem>>) attributes {dimension_semantics = [#tpu.dimension_semantics<parallel>, #tpu.dimension_semantics<arbitrary>], iteration_bounds = array<i64: 2, 1>, scalar_prefetch = 0 : i64, scratch_operands = 0 : i64, tpu.core_type = #tpu.core_type<tc>, window_params = [{transform_indices = @transform_0, window_bounds = array<i64: 1, 64, 128>}, {transform_indices = @transform_1, window_bounds = array<i64: 1, 2, 128>}]} {
    %c0 = arith.constant 0 : index
    %c0_0 = arith.constant 0 : index
    %c0_1 = arith.constant 0 : index
    %0 = vector.load %arg2[%c0, %c0_0, %c0_1] : memref<1x64x128xf32, #tpu.memory_space<vmem>>, vector<1x64x128xf32>
    %1 = vector.shape_cast %0 : vector<1x64x128xf32> to vector<64x128xf32>
    %cst = arith.constant dense<0.000000e+00> : vector<128xf32>
    %2 = vector.multi_reduction <add>, %1, %cst [0] : vector<64x128xf32> to vector<128xf32>
    %3 = vector.shape_cast %2 : vector<128xf32> to vector<1x128xf32>
    %4 = arith.mulf %1, %1 : vector<64x128xf32>
    %cst_2 = arith.constant dense<0.000000e+00> : vector<128xf32>
    %5 = vector.multi_reduction <add>, %4, %cst_2 [0] : vector<64x128xf32> to vector<128xf32>
    %6 = vector.shape_cast %5 : vector<128xf32> to vector<1x128xf32>
    %7 = tpu.concatenate %3, %6 in 0 : vector<1x128xf32>, vector<1x128xf32> -> vector<2x128xf32>
    %c0_i32 = arith.constant 0 : i32
    %8 = arith.cmpi eq, %arg1, %c0_i32 : i32
    %9 = arith.extui %8 : i1 to i32
    %c0_i32_3 = arith.constant 0 : i32
    %10 = arith.cmpi ne, %9, %c0_i32_3 : i32
    scf.if %10 {
      %c0_6 = arith.constant 0 : index
      %c0_7 = arith.constant 0 : index
      %c0_8 = arith.constant 0 : index
      %14 = vector.load %arg3[%c0_6, %c0_7, %c0_8] : memref<1x2x128xf32, #tpu.memory_space<vmem>>, vector<1x2x128xf32>
      %15 = vector.shape_cast %14 : vector<1x2x128xf32> to vector<2x128xf32>
      %16 = vector.shape_cast %7 : vector<2x128xf32> to vector<1x2x128xf32>
      tpu.vector_store %arg3[%c0_6, %c0_7, %c0_8], %16 {strides = array<i32>} : memref<1x2x128xf32, #tpu.memory_space<vmem>>, vector<1x2x128xf32>,
    } else {
    }
    %c0_i32_4 = arith.constant 0 : i32
    %11 = arith.cmpi ne, %arg1, %c0_i32_4 : i32
    %12 = arith.extui %11 : i1 to i32
    %c0_i32_5 = arith.constant 0 : i32
    %13 = arith.cmpi ne, %12, %c0_i32_5 : i32
    scf.if %13 {
      %c0_6 = arith.constant 0 : index
      %c0_7 = arith.constant 0 : index
      %c0_8 = arith.constant 0 : index
      %14 = vector.load %arg3[%c0_6, %c0_7, %c0_8] : memref<1x2x128xf32, #tpu.memory_space<vmem>>, vector<1x2x128xf32>
      %15 = vector.shape_cast %14 : vector<1x2x128xf32> to vector<2x128xf32>
      %16 = arith.addf %15, %7 : vector<2x128xf32>
      %c0_9 = arith.constant 0 : index
      %c0_10 = arith.constant 0 : index
      %c0_11 = arith.constant 0 : index
      %17 = vector.load %arg3[%c0_9, %c0_10, %c0_11] : memref<1x2x128xf32, #tpu.memory_space<vmem>>, vector<1x2x128xf32>
      %18 = vector.shape_cast %17 : vector<1x2x128xf32> to vector<2x128xf32>
      %19 = vector.shape_cast %16 : vector<2x128xf32> to vector<1x2x128xf32>
      tpu.vector_store %arg3[%c0_9, %c0_10, %c0_11], %19 {strides = array<i32>} : memref<1x2x128xf32, #tpu.memory_space<vmem>>, vector<1x2x128xf32>,
    } else {
    }
    return
  }
  func.func @transform_0(%arg0: i32, %arg1: i32) -> (i32, i32, i32) {
    %c0_i32 = arith.constant 0 : i32
    %c0_i32_0 = arith.constant 0 : i32
    return %arg0, %arg1, %c0_i32 : i32, i32, i32
  }
  func.func @transform_1(%arg0: i32, %arg1: i32) -> (i32, i32, i32) {
    %c0_i32 = arith.constant 0 : i32
    %c0_i32_0 = arith.constant 0 : i32
    %c0_i32_1 = arith.constant 0 : i32
    return %arg0, %c0_i32, %c0_i32_0 : i32, i32, i32
  }
}

module attributes {stable_mosaic.version = 11 : i64} {
  func.func @_in_norm_relu_kernel(%arg0: i32, %arg1: i32, %arg2: memref<1x2x128xf32, #tpu.memory_space<vmem>>, %arg3: memref<1x64x128xf32, #tpu.memory_space<vmem>>, %arg4: memref<1x64x128xf32, #tpu.memory_space<vmem>>) attributes {dimension_semantics = [#tpu.dimension_semantics<parallel>, #tpu.dimension_semantics<parallel>], iteration_bounds = array<i64: 2, 1>, scalar_prefetch = 0 : i64, scratch_operands = 0 : i64, tpu.core_type = #tpu.core_type<tc>, window_params = [{transform_indices = @transform_0, window_bounds = array<i64: 1, 2, 128>}, {transform_indices = @transform_1, window_bounds = array<i64: 1, 64, 128>}, {transform_indices = @transform_2, window_bounds = array<i64: 1, 64, 128>}]} {
    %c0 = arith.constant 0 : index
    %c0_0 = arith.constant 0 : index
    %c0_1 = arith.constant 0 : index
    %0 = vector.load %arg2[%c0, %c0_0, %c0_1] : memref<1x2x128xf32, #tpu.memory_space<vmem>>, vector<1x2x128xf32>
    %1 = vector.shape_cast %0 : vector<1x2x128xf32> to vector<2x128xf32>
    %2 = vector.extract_strided_slice %1 {offsets = [0, 0], sizes = [1, 128], strides = [1, 1]} : vector<2x128xf32> to vector<1x128xf32>
    %cst = arith.constant 1.562500e-02 : f32
    %3 = vector.broadcast %cst : f32 to vector<1x128xf32>
    %4 = arith.mulf %2, %3 : vector<1x128xf32>
    %5 = vector.extract_strided_slice %1 {offsets = [1, 0], sizes = [1, 128], strides = [1, 1]} : vector<2x128xf32> to vector<1x128xf32>
    %cst_2 = arith.constant 1.562500e-02 : f32
    %6 = vector.broadcast %cst_2 : f32 to vector<1x128xf32>
    %7 = arith.mulf %5, %6 : vector<1x128xf32>
    %8 = arith.mulf %4, %4 : vector<1x128xf32>
    %9 = arith.subf %7, %8 : vector<1x128xf32>
    %cst_3 = arith.constant 9.99999974E-6 : f32
    %10 = vector.broadcast %cst_3 : f32 to vector<1x128xf32>
    %11 = arith.addf %9, %10 : vector<1x128xf32>
    %12 = math.rsqrt %11 : vector<1x128xf32>
    %cst_4 = arith.constant 0.000000e+00 : f32
    %13 = vector.broadcast %cst_4 : f32 to vector<1x128xf32>
    %14 = arith.subf %13, %4 : vector<1x128xf32>
    %15 = arith.mulf %14, %12 : vector<1x128xf32>
    %c0_5 = arith.constant 0 : index
    %c0_6 = arith.constant 0 : index
    %c0_7 = arith.constant 0 : index
    %16 = vector.load %arg3[%c0_5, %c0_6, %c0_7] : memref<1x64x128xf32, #tpu.memory_space<vmem>>, vector<1x64x128xf32>
    %17 = vector.shape_cast %16 : vector<1x64x128xf32> to vector<64x128xf32>
    %18 = vector.broadcast %12 : vector<1x128xf32> to vector<64x128xf32>
    %19 = arith.mulf %17, %18 : vector<64x128xf32>
    %20 = vector.broadcast %15 : vector<1x128xf32> to vector<64x128xf32>
    %21 = arith.addf %19, %20 : vector<64x128xf32>
    %cst_8 = arith.constant 0.000000e+00 : f32
    %22 = vector.broadcast %cst_8 : f32 to vector<64x128xf32>
    %23 = arith.maximumf %21, %22 : vector<64x128xf32>
    %c0_9 = arith.constant 0 : index
    %c0_10 = arith.constant 0 : index
    %c0_11 = arith.constant 0 : index
    %24 = vector.load %arg4[%c0_9, %c0_10, %c0_11] : memref<1x64x128xf32, #tpu.memory_space<vmem>>, vector<1x64x128xf32>
    %25 = vector.shape_cast %24 : vector<1x64x128xf32> to vector<64x128xf32>
    %26 = vector.shape_cast %23 : vector<64x128xf32> to vector<1x64x128xf32>
    tpu.vector_store %arg4[%c0_9, %c0_10, %c0_11], %26 {strides = array<i32>} : memref<1x64x128xf32, #tpu.memory_space<vmem>>, vector<1x64x128xf32>,
    return
  }
  func.func @transform_0(%arg0: i32, %arg1: i32) -> (i32, i32, i32) {
    %c0_i32 = arith.constant 0 : i32
    %c0_i32_0 = arith.constant 0 : i32
    %c0_i32_1 = arith.constant 0 : i32
    return %arg0, %c0_i32, %c0_i32_0 : i32, i32, i32
  }
  func.func @transform_1(%arg0: i32, %arg1: i32) -> (i32, i32, i32) {
    %c0_i32 = arith.constant 0 : i32
    %c0_i32_0 = arith.constant 0 : i32
    return %arg0, %arg1, %c0_i32 : i32, i32, i32
  }
  func.func @transform_2(%arg0: i32, %arg1: i32) -> (i32, i32, i32) {
    %c0_i32 = arith.constant 0 : i32
    %c0_i32_0 = arith.constant 0 : i32
    return %arg0, %arg1, %c0_i32 : i32, i32, i32
  }
}

</mosaic_0001>

<bundles_post_ra>
// kernel: ud_forward.4
= control target key start
LH: loop header
LB: loop body
LE: loop exit
PB: predicated region body
PF: predicated region fallthrough
CT: control target
= control target key end

     0   :  { %s1609_s9 = smov 0   ;;  %s1611_s10 = smov 0   ;;  %s1770_s0 = inlined_call_operand.vmem [shape: bf16[1024,128], index: 0, kind: input, shape index: {}]   ;;  %s1771_s1 = inlined_call_operand.vmem [shape: bf16[128,128], index: 1, kind: input, shape index: {}]   ;;  %s1772_s2 = inlined_call_operand.vmem [shape: f32[1024,128], index: 2, kind: output, shape index: {}]  }
   0x1   :  { %s1613_s11 = smov 0  }
   0x2 LB: > { %s31_s12 = sadd.s32 1, %s1588_s10  ;;  %p1323_p0 = scmp.ge.s32.totalorder %s1592_s11, 1  ;;  %s1592_s11 = sphi %s1613_s11, %s12_s11   ;;  %s1588_s10 = sphi %s1611_s10, %s1774_s10   ;;  %s1584_s9 = sphi %s1609_s9, %s1773_s9  }
   0x3   : > { %p33_p1 = scmp.ge.s32.totalorder %s31_s12, 2  ;;  %p155_p2 = scmp.lt.s32.totalorder %s1592_s11, 3 }
   0x5   : > { %s1776_s12 = smov (%p33_p1, %s31_s12), 0  ;;  %p156_p3 = pnand %p1323_p0, %p155_p2 }
   0x6   : > { %v1530_v0 = vld [vmem:[%s1771_s1] sm:$0xff] (!%p156_p3)   ;;  %s1324_s15 = sshll.u32 (!%p156_p3), %s1584_s9, 6  ;;  %v1531_v1 = vld [vmem:[%s1771_s1 + $0x8] sm:$0xff] (!%p156_p3)   ;;  %v1532_v2 = vld [vmem:[%s1771_s1 + $0x10] sm:$0xff] (!%p156_p3)  }
   0x7   : > { %159 = sbr.rel (%p156_p3) target bundleno = 311 (0x137), region = 28  ;;  %p192_p4 = scmp.lt.s32.totalorder (!%p156_p3), %s1324_s15, 127  ;;  %1410 = vmatprep.subr.bf16.mxu0 (!%p156_p3), %v1530_v0  ;;  %1490 = vmatprep.subr.bf16.mxu1 (!%p156_p3), %v1530_v0  ;;  %v1533_v3 = vld [vmem:[%s1771_s1 + $0x18] sm:$0xff] (!%p156_p3)   ;;  %v1534_v6 = vld [vmem:[%s1771_s1 + $0x20] sm:$0xff] (!%p156_p3)   ;;  %v1535_v7 = vld [vmem:[%s1771_s1 + $0x28] sm:$0xff] (!%p156_p3)  }
   0x8   : > { %1411 = vmatpush3.bf16.msra.mxu0 (!%p156_p3), %v1530_v0  ;;  %1498 = vmatpush3.bf16.msra.mxu1 (!%p156_p3), %v1530_v0  ;;  %v1536_v8 = vld [vmem:[%s1771_s1 + $0x30] sm:$0xff] (!%p156_p3)   ;;  %v1537_v9 = vld [vmem:[%s1771_s1 + $0x38] sm:$0xff] (!%p156_p3)  }
   0x9   : > { %1412 = vmatprep.subr.bf16.mxu0 (!%p156_p3), %v1531_v1  ;;  %1491 = vmatprep.subr.bf16.mxu1 (!%p156_p3), %v1531_v1 }
   0xc   : > { %1413 = vmatpush3.bf16.msra.mxu0 (!%p156_p3), %v1531_v1  ;;  %1499 = vmatpush3.bf16.msra.mxu1 (!%p156_p3), %v1531_v1 }
   0xd   : > { %1414 = vmatprep.subr.bf16.mxu0 (!%p156_p3), %v1532_v2  ;;  %1492 = vmatprep.subr.bf16.mxu1 (!%p156_p3), %v1532_v2 }
   0xe   : > { %s1778_s15 = smov (!%p192_p4, %s1324_s15), 127 }
   0xf   : > { %s1325_s20 = sshll.u32 %s1778_s15, 2  ;;  %s1327_s6 = sshll.u32 %s1778_s15, 3 }
  0x10   : > { %s1642_s23 = scalar_lea.vmem %s1770_s0, %s1325_s20  ;;  %1415 = vmatpush3.bf16.msra.mxu0 %v1532_v2  ;;  %1500 = vmatpush3.bf16.msra.mxu1 %v1532_v2  ;;  %s1695_s9 = scalar_lea.vmem %s1772_s2, %s1327_s6 }
  0x11   : > { %v1538_v4 = vld [vmem:[%s1642_s23] sm:$0xff]   ;;  %1416 = vmatprep.subr.bf16.mxu0 %v1533_v3  ;;  %1493 = vmatprep.subr.bf16.mxu1 %v1533_v3  ;;  %v1540_v10 = vld [vmem:[%s1642_s23 + $0x8] sm:$0xff]   ;;  %v1542_v12 = vld [vmem:[%s1642_s23 + $0x10] sm:$0xff]  }
  0x12   : > { %v1539_v5 = vld [vmem:[%s1642_s23 + $0x80] sm:$0xff]   ;;  %1426 = vmatprep.mubr.bf16.mxu0 %v1538_v4  ;;  %v1541_v11 = vld [vmem:[%s1642_s23 + $0x88] sm:$0xff]   ;;  %v1543_v13 = vld [vmem:[%s1642_s23 + $0x90] sm:$0xff]  }
  0x13   : > { %1458 = vmatprep.mubr.bf16.mxu1 %v1539_v5  ;;  %v1544_v14 = vld [vmem:[%s1642_s23 + $0x18] sm:$0xff]   ;;  %v1546_v16 = vld [vmem:[%s1642_s23 + $0x20] sm:$0xff]   ;;  %v1548_v18 = vld [vmem:[%s1642_s23 + $0x28] sm:$0xff]  }
  0x14   : > { %1417 = vmatpush3.bf16.msra.mxu0 %v1533_v3  ;;  %1501 = vmatpush3.bf16.msra.mxu1 %v1533_v3  ;;  %v1545_v15 = vld [vmem:[%s1642_s23 + $0x98] sm:$0xff]   ;;  %v1547_v17 = vld [vmem:[%s1642_s23 + $0xa0] sm:$0xff]   ;;  %v1549_v19 = vld [vmem:[%s1642_s23 + $0xa8] sm:$0xff]  }
  0x15   : > { %1418 = vmatprep.subr.bf16.mxu0 %v1534_v6  ;;  %1494 = vmatprep.subr.bf16.mxu1 %v1534_v6  ;;  %v1550_v20 = vld [vmem:[%s1642_s23 + $0x30] sm:$0xff]   ;;  %v1552_v22 = vld [vmem:[%s1642_s23 + $0x38] sm:$0xff]   ;;  %v1554_v24 = vld [vmem:[%s1642_s23 + $0x40] sm:$0xff]  }
  0x16   : > { %v1551_v21 = vld [vmem:[%s1642_s23 + $0xb0] sm:$0xff]   ;;  %v1553_v23 = vld [vmem:[%s1642_s23 + $0xb8] sm:$0xff]   ;;  %v1555_v25 = vld [vmem:[%s1642_s23 + $0xc0] sm:$0xff]  }
  0x17   : > { %v1556_v26 = vld [vmem:[%s1642_s23 + $0x48] sm:$0xff]   ;;  %v1558_v28 = vld [vmem:[%s1642_s23 + $0x50] sm:$0xff]   ;;  %v1560_v30 = vld [vmem:[%s1642_s23 + $0x58] sm:$0xff]  }
  0x18   : > { %1419 = vmatpush3.bf16.msra.mxu0 %v1534_v6  ;;  %1502 = vmatpush3.bf16.msra.mxu1 %v1534_v6  ;;  %v1557_v27 = vld [vmem:[%s1642_s23 + $0xc8] sm:$0xff]   ;;  %v1559_v29 = vld [vmem:[%s1642_s23 + $0xd0] sm:$0xff]   ;;  %v1561_v31 = vld [vmem:[%s1642_s23 + $0xd8] sm:$0xff]  }
  0x19   : > { %1420 = vmatprep.subr.bf16.mxu0 %v1535_v7  ;;  %1495 = vmatprep.subr.bf16.mxu1 %v1535_v7  ;;  %v1562_v32 = vld [vmem:[%s1642_s23 + $0x60] sm:$0xff]   ;;  %v1564_v34 = vld [vmem:[%s1642_s23 + $0x68] sm:$0xff]   ;;  %v1566_v36 = vld [vmem:[%s1642_s23 + $0x70] sm:$0xff]  }
  0x1a   : > { %v1563_v33 = vld [vmem:[%s1642_s23 + $0xe0] sm:$0xff]   ;;  %v1565_v35 = vld [vmem:[%s1642_s23 + $0xe8] sm:$0xff]   ;;  %v1567_v37 = vld [vmem:[%s1642_s23 + $0xf0] sm:$0xff]  }
  0x1b   : > { %v1568_v38 = vld [vmem:[%s1642_s23 + $0x78] sm:$0xff]  }
  0x1c   : > { %1421 = vmatpush3.bf16.msra.mxu0 %v1535_v7  ;;  %1503 = vmatpush3.bf16.msra.mxu1 %v1535_v7  ;;  %v1569_v39 = vld [vmem:[%s1642_s23 + $0xf8] sm:$0xff]  }
  0x1d   : > { %1422 = vmatprep.subr.bf16.mxu0 %v1536_v8  ;;  %1496 = vmatprep.subr.bf16.mxu1 %v1536_v8 }
  0x20   : > { %1423 = vmatpush3.bf16.msra.mxu0 %v1536_v8  ;;  %1504 = vmatpush3.bf16.msra.mxu1 %v1536_v8 }
  0x21   : > { %1424 = vmatprep.subr.bf16.mxu0 %v1537_v9  ;;  %1497 = vmatprep.subr.bf16.mxu1 %v1537_v9 }
  0x24   : > { %1425 = vmatpush3.bf16.msra.mxu0 %v1537_v9  ;;  %1505 = vmatpush3.bf16.msra.mxu1 %v1537_v9 }
  0x27   : > { %1427 = vmatmul.mubr.bf16.vlgmr.msra.gmra.mrb[0].mxu0 %v1540_v10  ;;  %1459 = vmatmul.mubr.bf16.vlgmr.msra.gmra.mrb[0].mxu1 %v1541_v11 }
  0x28   : > { %1430 = vmatprep.mubr.bf16.mxu0 %v1542_v12  ;;  %1462 = vmatprep.mubr.bf16.mxu1 %v1543_v13 }
  0x2f   : > { %1431 = vmatmul.mubr.bf16.gmra.mrb[4].mxu0 %v1544_v14  ;;  %1463 = vmatmul.mubr.bf16.gmra.mrb[4].mxu1 %v1545_v15 }
  0x30   : > { %1434 = vmatprep.mubr.bf16.mxu0 %v1546_v16  ;;  %1466 = vmatprep.mubr.bf16.mxu1 %v1547_v17 }
  0x37   : > { %1435 = vmatmul.mubr.bf16.gmra.mrb[8].mxu0 %v1548_v18  ;;  %1467 = vmatmul.mubr.bf16.gmra.mrb[8].mxu1 %v1549_v19 }
  0x38   : > { %1438 = vmatprep.mubr.bf16.mxu0 %v1550_v20  ;;  %1470 = vmatprep.mubr.bf16.mxu1 %v1551_v21 }
  0x3f   : > { %1439 = vmatmul.mubr.bf16.gmra.mrb[12].mxu0 %v1552_v22  ;;  %1471 = vmatmul.mubr.bf16.gmra.mrb[12].mxu1 %v1553_v23 }
  0x40   : > { %1442 = vmatprep.mubr.bf16.mxu0 %v1554_v24  ;;  %1474 = vmatprep.mubr.bf16.mxu1 %v1555_v25 }
  0x47   : > { %1443 = vmatmul.mubr.bf16.gmra.mrb[16].mxu0 %v1556_v26  ;;  %1475 = vmatmul.mubr.bf16.gmra.mrb[16].mxu1 %v1557_v27 }
  0x48   : > { %1446 = vmatprep.mubr.bf16.mxu0 %v1558_v28  ;;  %1478 = vmatprep.mubr.bf16.mxu1 %v1559_v29 }
  0x4f   : > { %1447 = vmatmul.mubr.bf16.gmra.mrb[20].mxu0 %v1560_v30  ;;  %1479 = vmatmul.mubr.bf16.gmra.mrb[20].mxu1 %v1561_v31 }
  0x50   : > { %1450 = vmatprep.mubr.bf16.mxu0 %v1562_v32  ;;  %1482 = vmatprep.mubr.bf16.mxu1 %v1563_v33 }
  0x57   : > { %1451 = vmatmul.mubr.bf16.gmra.mrb[24].mxu0 %v1564_v34  ;;  %1483 = vmatmul.mubr.bf16.gmra.mrb[24].mxu1 %v1565_v35 }
  0x58   : > { %1454 = vmatprep.mubr.bf16.mxu0 %v1566_v36  ;;  %1486 = vmatprep.mubr.bf16.mxu1 %v1567_v37 }
  0x5f   : > { %1455 = vmatmul.mubr.bf16.gmra.mrb[28].mxu0 %v1568_v38  ;;  %1487 = vmatmul.mubr.bf16.gmra.mrb[28].mxu1 %v1569_v39 }
  0xfa   : > { %v1428_v40 = vpop.f32.mrb[0].mxu0  ;;  %v1460_v41 = vpop.f32.mrb[0].mxu1 }
  0xfb   : > { %1157 = vst [vmem:[%s1695_s9 + $0x10] sm:$0xff] %v1428_v40  ;;  %1189 = vst [vmem:[%s1695_s9 + $0x110] sm:$0xff] %v1460_v41  ;;  %v705_v42 = vpop.f32.mrb[1].mxu0  ;;  %v833_v43 = vpop.f32.mrb[1].mxu1 }
  0xfc   : > { %1155 = vst [vmem:[%s1695_s9] sm:$0xff] %v705_v42  ;;  %1187 = vst [vmem:[%s1695_s9 + $0x100] sm:$0xff] %v833_v43  ;;  %v1429_v44 = vpop.f32.mrb[2].mxu0  ;;  %v1461_v45 = vpop.f32.mrb[2].mxu1 }
  0xfd   : > { %1158 = vst [vmem:[%s1695_s9 + $0x18] sm:$0xff] %v1429_v44  ;;  %1190 = vst [vmem:[%s1695_s9 + $0x118] sm:$0xff] %v1461_v45  ;;  %v708_v46 = vpop.f32.mrb[3].mxu0  ;;  %v836_v47 = vpop.f32.mrb[3].mxu1 }
  0xfe   : > { %1156 = vst [vmem:[%s1695_s9 + $0x8] sm:$0xff] %v708_v46  ;;  %1188 = vst [vmem:[%s1695_s9 + $0x108] sm:$0xff] %v836_v47 }
 0x102   : > { %v1432_v48 = vpop.f32.mrb[4].mxu0  ;;  %v1464_v49 = vpop.f32.mrb[4].mxu1 }
 0x103   : > { %1161 = vst [vmem:[%s1695_s9 + $0x30] sm:$0xff] %v1432_v48  ;;  %1193 = vst [vmem:[%s1695_s9 + $0x130] sm:$0xff] %v1464_v49  ;;  %v721_v50 = vpop.f32.mrb[5].mxu0  ;;  %v849_v51 = vpop.f32.mrb[5].mxu1 }
 0x104   : > { %1159 = vst [vmem:[%s1695_s9 + $0x20] sm:$0xff] %v721_v50  ;;  %1191 = vst [vmem:[%s1695_s9 + $0x120] sm:$0xff] %v849_v51  ;;  %v1433_v52 = vpop.f32.mrb[6].mxu0  ;;  %v1465_v53 = vpop.f32.mrb[6].mxu1 }
 0x105   : > { %1162 = vst [vmem:[%s1695_s9 + $0x38] sm:$0xff] %v1433_v52  ;;  %1194 = vst [vmem:[%s1695_s9 + $0x138] sm:$0xff] %v1465_v53  ;;  %v724_v54 = vpop.f32.mrb[7].mxu0  ;;  %v852_v55 = vpop.f32.mrb[7].mxu1 }
 0x106   : > { %1160 = vst [vmem:[%s1695_s9 + $0x28] sm:$0xff] %v724_v54  ;;  %1192 = vst [vmem:[%s1695_s9 + $0x128] sm:$0xff] %v852_v55 }
 0x10a   : > { %v1436_v56 = vpop.f32.mrb[8].mxu0  ;;  %v1468_v57 = vpop.f32.mrb[8].mxu1 }
 0x10b   : > { %1165 = vst [vmem:[%s1695_s9 + $0x50] sm:$0xff] %v1436_v56  ;;  %1197 = vst [vmem:[%s1695_s9 + $0x150] sm:$0xff] %v1468_v57  ;;  %v737_v58 = vpop.f32.mrb[9].mxu0  ;;  %v865_v59 = vpop.f32.mrb[9].mxu1 }
 0x10c   : > { %1163 = vst [vmem:[%s1695_s9 + $0x40] sm:$0xff] %v737_v58  ;;  %1195 = vst [vmem:[%s1695_s9 + $0x140] sm:$0xff] %v865_v59  ;;  %v1437_v60 = vpop.f32.mrb[10].mxu0  ;;  %v1469_v61 = vpop.f32.mrb[10].mxu1 }
 0x10d   : > { %1166 = vst [vmem:[%s1695_s9 + $0x58] sm:$0xff] %v1437_v60  ;;  %1198 = vst [vmem:[%s1695_s9 + $0x158] sm:$0xff] %v1469_v61  ;;  %v740_v62 = vpop.f32.mrb[11].mxu0  ;;  %v868_v63 = vpop.f32.mrb[11].mxu1 }
 0x10e   : > { %1164 = vst [vmem:[%s1695_s9 + $0x48] sm:$0xff] %v740_v62  ;;  %1196 = vst [vmem:[%s1695_s9 + $0x148] sm:$0xff] %v868_v63 }
 0x112   : > { %v1440_v0 = vpop.f32.mrb[12].mxu0  ;;  %v1472_v1 = vpop.f32.mrb[12].mxu1 }
 0x113   : > { %1169 = vst [vmem:[%s1695_s9 + $0x70] sm:$0xff] %v1440_v0  ;;  %1201 = vst [vmem:[%s1695_s9 + $0x170] sm:$0xff] %v1472_v1  ;;  %v753_v2 = vpop.f32.mrb[13].mxu0  ;;  %v881_v3 = vpop.f32.mrb[13].mxu1 }
 0x114   : > { %1167 = vst [vmem:[%s1695_s9 + $0x60] sm:$0xff] %v753_v2  ;;  %1199 = vst [vmem:[%s1695_s9 + $0x160] sm:$0xff] %v881_v3  ;;  %v1441_v4 = vpop.f32.mrb[14].mxu0  ;;  %v1473_v5 = vpop.f32.mrb[14].mxu1 }
 0x115   : > { %1170 = vst [vmem:[%s1695_s9 + $0x78] sm:$0xff] %v1441_v4  ;;  %1202 = vst [vmem:[%s1695_s9 + $0x178] sm:$0xff] %v1473_v5  ;;  %v756_v6 = vpop.f32.mrb[15].mxu0  ;;  %v884_v7 = vpop.f32.mrb[15].mxu1 }
 0x116   : > { %1168 = vst [vmem:[%s1695_s9 + $0x68] sm:$0xff] %v756_v6  ;;  %1200 = vst [vmem:[%s1695_s9 + $0x168] sm:$0xff] %v884_v7 }
 0x11a   : > { %v1444_v8 = vpop.f32.mrb[16].mxu0  ;;  %v1476_v9 = vpop.f32.mrb[16].mxu1 }
 0x11b   : > { %1173 = vst [vmem:[%s1695_s9 + $0x90] sm:$0xff] %v1444_v8  ;;  %1205 = vst [vmem:[%s1695_s9 + $0x190] sm:$0xff] %v1476_v9  ;;  %v769_v10 = vpop.f32.mrb[17].mxu0  ;;  %v897_v11 = vpop.f32.mrb[17].mxu1 }
 0x11c   : > { %1171 = vst [vmem:[%s1695_s9 + $0x80] sm:$0xff] %v769_v10  ;;  %1203 = vst [vmem:[%s1695_s9 + $0x180] sm:$0xff] %v897_v11  ;;  %v1445_v12 = vpop.f32.mrb[18].mxu0  ;;  %v1477_v13 = vpop.f32.mrb[18].mxu1 }
 0x11d   : > { %1174 = vst [vmem:[%s1695_s9 + $0x98] sm:$0xff] %v1445_v12  ;;  %1206 = vst [vmem:[%s1695_s9 + $0x198] sm:$0xff] %v1477_v13  ;;  %v772_v14 = vpop.f32.mrb[19].mxu0  ;;  %v900_v15 = vpop.f32.mrb[19].mxu1 }
 0x11e   : > { %1172 = vst [vmem:[%s1695_s9 + $0x88] sm:$0xff] %v772_v14  ;;  %1204 = vst [vmem:[%s1695_s9 + $0x188] sm:$0xff] %v900_v15 }
 0x122   : > { %v1448_v16 = vpop.f32.mrb[20].mxu0  ;;  %v1480_v17 = vpop.f32.mrb[20].mxu1 }
 0x123   : > { %1177 = vst [vmem:[%s1695_s9 + $0xb0] sm:$0xff] %v1448_v16  ;;  %1209 = vst [vmem:[%s1695_s9 + $0x1b0] sm:$0xff] %v1480_v17  ;;  %v785_v18 = vpop.f32.mrb[21].mxu0  ;;  %v913_v19 = vpop.f32.mrb[21].mxu1 }
 0x124   : > { %1175 = vst [vmem:[%s1695_s9 + $0xa0] sm:$0xff] %v785_v18  ;;  %1207 = vst [vmem:[%s1695_s9 + $0x1a0] sm:$0xff] %v913_v19  ;;  %v1449_v20 = vpop.f32.mrb[22].mxu0  ;;  %v1481_v21 = vpop.f32.mrb[22].mxu1 }
 0x125   : > { %1178 = vst [vmem:[%s1695_s9 + $0xb8] sm:$0xff] %v1449_v20  ;;  %1210 = vst [vmem:[%s1695_s9 + $0x1b8] sm:$0xff] %v1481_v21  ;;  %v788_v22 = vpop.f32.mrb[23].mxu0  ;;  %v916_v23 = vpop.f32.mrb[23].mxu1 }
 0x126   : > { %1176 = vst [vmem:[%s1695_s9 + $0xa8] sm:$0xff] %v788_v22  ;;  %1208 = vst [vmem:[%s1695_s9 + $0x1a8] sm:$0xff] %v916_v23 }
 0x12a   : > { %v1452_v24 = vpop.f32.mrb[24].mxu0  ;;  %v1484_v25 = vpop.f32.mrb[24].mxu1 }
 0x12b   : > { %1181 = vst [vmem:[%s1695_s9 + $0xd0] sm:$0xff] %v1452_v24  ;;  %1213 = vst [vmem:[%s1695_s9 + $0x1d0] sm:$0xff] %v1484_v25  ;;  %v801_v26 = vpop.f32.mrb[25].mxu0  ;;  %v929_v27 = vpop.f32.mrb[25].mxu1 }
 0x12c   : > { %1179 = vst [vmem:[%s1695_s9 + $0xc0] sm:$0xff] %v801_v26  ;;  %1211 = vst [vmem:[%s1695_s9 + $0x1c0] sm:$0xff] %v929_v27  ;;  %v1453_v28 = vpop.f32.mrb[26].mxu0  ;;  %v1485_v29 = vpop.f32.mrb[26].mxu1 }
 0x12d   : > { %1182 = vst [vmem:[%s1695_s9 + $0xd8] sm:$0xff] %v1453_v28  ;;  %1214 = vst [vmem:[%s1695_s9 + $0x1d8] sm:$0xff] %v1485_v29  ;;  %v804_v30 = vpop.f32.mrb[27].mxu0  ;;  %v932_v31 = vpop.f32.mrb[27].mxu1 }
 0x12e   : > { %1180 = vst [vmem:[%s1695_s9 + $0xc8] sm:$0xff] %v804_v30  ;;  %1212 = vst [vmem:[%s1695_s9 + $0x1c8] sm:$0xff] %v932_v31 }
 0x132   : > { %v1456_v32 = vpop.f32.mrb[28].mxu0  ;;  %v1488_v33 = vpop.f32.mrb[28].mxu1 }
 0x133   : > { %1185 = vst [vmem:[%s1695_s9 + $0xf0] sm:$0xff] %v1456_v32  ;;  %1217 = vst [vmem:[%s1695_s9 + $0x1f0] sm:$0xff] %v1488_v33  ;;  %v817_v34 = vpop.f32.mrb[29].mxu0  ;;  %v945_v35 = vpop.f32.mrb[29].mxu1 }
 0x134   : > { %1183 = vst [vmem:[%s1695_s9 + $0xe0] sm:$0xff] %v817_v34  ;;  %1215 = vst [vmem:[%s1695_s9 + $0x1e0] sm:$0xff] %v945_v35  ;;  %v1457_v36 = vpop.f32.mrb[30].mxu0  ;;  %v1489_v37 = vpop.f32.mrb[30].mxu1 }
 0x135   : > { %1186 = vst [vmem:[%s1695_s9 + $0xf8] sm:$0xff] %v1457_v36  ;;  %1218 = vst [vmem:[%s1695_s9 + $0x1f8] sm:$0xff] %v1489_v37  ;;  %v820_v38 = vpop.f32.mrb[31].mxu0  ;;  %v948_v39 = vpop.f32.mrb[31].mxu1 }
 0x136   : > { %1184 = vst [vmem:[%s1695_s9 + $0xe8] sm:$0xff] %v820_v38  ;;  %1216 = vst [vmem:[%s1695_s9 + $0x1e8] sm:$0xff] %v948_v39 }
 0x137 PF: > { %s12_s11 = sadd.s32 1, %s1592_s11   ;;  %s1773_s9 = smov %s1588_s10 }
 0x138   : > { %p9_p5 = scmp.ge.s32.totalorder %s12_s11, 4   ;;  %s1774_s10 = smov %s1776_s12 }
 0x13a   :  { %11 = sbr.rel (!%p9_p5) target bundleno = 2 (0x2), region = 69 }

// kernel: ud_forward.5
= control target key start
LH: loop header
LB: loop body
LE: loop exit
PB: predicated region body
PF: predicated region fallthrough
CT: control target
= control target key end

     0   :  { %s1526_s9 = smov 0   ;;  %s1528_s10 = smov 0   ;;  %s1777_s0 = inlined_call_operand.vmem [shape: bf16[128,1024], index: 0, kind: input, shape index: {}]   ;;  %s1778_s1 = inlined_call_operand.vmem [shape: bf16[1024,128], index: 1, kind: input, shape index: {}]   ;;  %s1779_s2 = inlined_call_operand.vmem [shape: f32[128,128], index: 2, kind: output, shape index: {}]  }
   0x1   :  { %s1530_s11 = smov 0   ;;  %s1532_s12 = smov 0  }
   0x2   :  { %s1534_s13 = smov 0  }
   0x3 LB: > { %s24_s14 = sadd.s32 1, %s1504_s12  ;;  %p47_p1 = scmp.ne.s32.totalorder %s1496_s10, %s1492_s9  ;;  %s1508_s13 = sphi %s1534_s13, %s12_s13   ;;  %s1504_s12 = sphi %s1532_s12, %s1783_s12   ;;  %s1500_s11 = sphi %s1530_s11, %s1782_s11   ;;  %s1496_s10 = sphi %s1528_s10, %s1781_s10   ;;  %s1492_s9 = sphi %s1526_s9, %s1780_s9  }
   0x4   : > { %p25_p0 = scmp.ge.s32.totalorder %s24_s14, 2  ;;  %p48_p2 = scmp.eq.s32.totalorder %s1508_s13, 0 }
   0x5   : > { %s40_s16 = sadd.s32 1, %s1496_s10  ;;  %p1142_p5 = scmp.ge.s32.totalorder %s1508_s13, 2 }
   0x6   : > { %s1785_s14 = smov (%p25_p0, %s24_s14), 0  ;;  %p49_p3 = por %p48_p2, %p47_p1 }
   0x7   : > { %s36_s15 = ssub.s32 %s1504_s12, %s1785_s14  ;;  %129 = sbr.rel (%p1142_p5) target bundleno = 34 (0x22), region = 16 }
   0x8   : > { %p38_p4 = scmp.eq.s32.totalorder %s36_s15, 0 }
   0xa   : > { %s1561_s17 = scalar_select %p38_p4, %s1496_s10, %s40_s16  }
   0xe   : > { %132 = sbr.rel (!%p49_p3) target bundleno = 34 (0x22), region = 20  ;;  %s134_s18 = sand.u32 (%p49_p3), 1, %s1496_s10  }
   0xf   : > { %s1220_s19 = sshll.u32 (%p49_p3), %s1504_s12, 4  ;;  %s1143_s20 = sshll.u32 (%p49_p3), %s134_s18, 8 }
  0x10   : > { %s1569_s23 = scalar_lea.vmem (%p49_p3), %s1777_s0, %s1220_s19  ;;  %s1574_s24 = scalar_lea.vmem (%p49_p3), [#allocation3], %s1143_s20 }
  0x11   : > { %v155_v0 = vld [vmem:[%s1569_s23] sm:$0xff] (%p49_p3)  ;;  %v157_v1 = vld [vmem:[%s1569_s23 + $0x8] sm:$0xff] (%p49_p3) }
  0x12   : > { %v159_v2 = vld [vmem:[%s1569_s23 + $0x20] sm:$0xff] (%p49_p3)  ;;  %156 = vst [vmem:[%s1574_s24] sm:$0xff] (%p49_p3), %v155_v0  ;;  %158 = vst [vmem:[%s1574_s24 + $0x8] sm:$0xff] (%p49_p3), %v157_v1  ;;  %v161_v3 = vld [vmem:[%s1569_s23 + $0x28] sm:$0xff] (%p49_p3) }
  0x13   : > { %160 = vst [vmem:[%s1574_s24 + $0x10] sm:$0xff] (%p49_p3), %v159_v2  ;;  %v163_v4 = vld [vmem:[%s1569_s23 + $0x40] sm:$0xff] (%p49_p3)  ;;  %v165_v5 = vld [vmem:[%s1569_s23 + $0x48] sm:$0xff] (%p49_p3)  ;;  %162 = vst [vmem:[%s1574_s24 + $0x18] sm:$0xff] (%p49_p3), %v161_v3 }
  0x14   : > { %164 = vst [vmem:[%s1574_s24 + $0x20] sm:$0xff] (%p49_p3), %v163_v4  ;;  %166 = vst [vmem:[%s1574_s24 + $0x28] sm:$0xff] (%p49_p3), %v165_v5  ;;  %v167_v6 = vld [vmem:[%s1569_s23 + $0x60] sm:$0xff] (%p49_p3)  ;;  %v169_v7 = vld [vmem:[%s1569_s23 + $0x68] sm:$0xff] (%p49_p3) }
  0x15   : > { %v171_v8 = vld [vmem:[%s1569_s23 + $0x80] sm:$0xff]  ;;  %168 = vst [vmem:[%s1574_s24 + $0x30] sm:$0xff] %v167_v6  ;;  %170 = vst [vmem:[%s1574_s24 + $0x38] sm:$0xff] %v169_v7  ;;  %v173_v9 = vld [vmem:[%s1569_s23 + $0x88] sm:$0xff] }
  0x16   : > { %172 = vst [vmem:[%s1574_s24 + $0x40] sm:$0xff] %v171_v8  ;;  %v175_v10 = vld [vmem:[%s1569_s23 + $0xa0] sm:$0xff]  ;;  %v177_v11 = vld [vmem:[%s1569_s23 + $0xa8] sm:$0xff]  ;;  %174 = vst [vmem:[%s1574_s24 + $0x48] sm:$0xff] %v173_v9 }
  0x17   : > { %176 = vst [vmem:[%s1574_s24 + $0x50] sm:$0xff] %v175_v10  ;;  %178 = vst [vmem:[%s1574_s24 + $0x58] sm:$0xff] %v177_v11  ;;  %v179_v12 = vld [vmem:[%s1569_s23 + $0xc0] sm:$0xff]  ;;  %v181_v13 = vld [vmem:[%s1569_s23 + $0xc8] sm:$0xff] }
  0x18   : > { %v183_v14 = vld [vmem:[%s1569_s23 + $0xe0] sm:$0xff]  ;;  %180 = vst [vmem:[%s1574_s24 + $0x60] sm:$0xff] %v179_v12  ;;  %182 = vst [vmem:[%s1574_s24 + $0x68] sm:$0xff] %v181_v13  ;;  %v185_v15 = vld [vmem:[%s1569_s23 + $0xe8] sm:$0xff] }
  0x19   : > { %184 = vst [vmem:[%s1574_s24 + $0x70] sm:$0xff] %v183_v14  ;;  %v187_v16 = vld [vmem:[%s1569_s23 + $0x100] sm:$0xff]  ;;  %v189_v17 = vld [vmem:[%s1569_s23 + $0x108] sm:$0xff]  ;;  %186 = vst [vmem:[%s1574_s24 + $0x78] sm:$0xff] %v185_v15 }
  0x1a   : > { %188 = vst [vmem:[%s1574_s24 + $0x80] sm:$0xff] %v187_v16  ;;  %190 = vst [vmem:[%s1574_s24 + $0x88] sm:$0xff] %v189_v17  ;;  %v191_v18 = vld [vmem:[%s1569_s23 + $0x120] sm:$0xff]  ;;  %v193_v19 = vld [vmem:[%s1569_s23 + $0x128] sm:$0xff] }
  0x1b   : > { %v195_v20 = vld [vmem:[%s1569_s23 + $0x140] sm:$0xff]  ;;  %192 = vst [vmem:[%s1574_s24 + $0x90] sm:$0xff] %v191_v18  ;;  %194 = vst [vmem:[%s1574_s24 + $0x98] sm:$0xff] %v193_v19  ;;  %v197_v21 = vld [vmem:[%s1569_s23 + $0x148] sm:$0xff] }
  0x1c   : > { %196 = vst [vmem:[%s1574_s24 + $0xa0] sm:$0xff] %v195_v20  ;;  %v199_v22 = vld [vmem:[%s1569_s23 + $0x160] sm:$0xff]  ;;  %v201_v23 = vld [vmem:[%s1569_s23 + $0x168] sm:$0xff]  ;;  %198 = vst [vmem:[%s1574_s24 + $0xa8] sm:$0xff] %v197_v21 }
  0x1d   : > { %200 = vst [vmem:[%s1574_s24 + $0xb0] sm:$0xff] %v199_v22  ;;  %202 = vst [vmem:[%s1574_s24 + $0xb8] sm:$0xff] %v201_v23  ;;  %v203_v24 = vld [vmem:[%s1569_s23 + $0x180] sm:$0xff]  ;;  %v205_v25 = vld [vmem:[%s1569_s23 + $0x188] sm:$0xff] }
  0x1e   : > { %v207_v26 = vld [vmem:[%s1569_s23 + $0x1a0] sm:$0xff]  ;;  %204 = vst [vmem:[%s1574_s24 + $0xc0] sm:$0xff] %v203_v24  ;;  %206 = vst [vmem:[%s1574_s24 + $0xc8] sm:$0xff] %v205_v25  ;;  %v209_v27 = vld [vmem:[%s1569_s23 + $0x1a8] sm:$0xff] }
  0x1f   : > { %208 = vst [vmem:[%s1574_s24 + $0xd0] sm:$0xff] %v207_v26  ;;  %v211_v28 = vld [vmem:[%s1569_s23 + $0x1c0] sm:$0xff]  ;;  %v213_v29 = vld [vmem:[%s1569_s23 + $0x1c8] sm:$0xff]  ;;  %210 = vst [vmem:[%s1574_s24 + $0xd8] sm:$0xff] %v209_v27 }
  0x20   : > { %212 = vst [vmem:[%s1574_s24 + $0xe0] sm:$0xff] %v211_v28  ;;  %214 = vst [vmem:[%s1574_s24 + $0xe8] sm:$0xff] %v213_v29  ;;  %v215_v30 = vld [vmem:[%s1569_s23 + $0x1e0] sm:$0xff]  ;;  %v217_v31 = vld [vmem:[%s1569_s23 + $0x1e8] sm:$0xff] }
  0x21   : > { %216 = vst [vmem:[%s1574_s24 + $0xf0] sm:$0xff] %v215_v30  ;;  %218 = vst [vmem:[%s1574_s24 + $0xf8] sm:$0xff] %v217_v31 }
  0x22 PF: > { %p1146_p6 = scmp.ge.s32.totalorder %s1508_s13, 1  ;;  %p235_p7 = scmp.lt.s32.totalorder %s1508_s13, 3 }
  0x24   : > { %p236_p8 = pnand %p1146_p6, %p235_p7 }
  0x25   : > { %s242_s25 = sand.u32 (!%p236_p8), 1, %s1492_s9   ;;  %s1148_s26 = sshll.u32 (!%p236_p8), %s1500_s11, 6 }
  0x26   : > { %239 = sbr.rel (%p236_p8) target bundleno = 376 (0x178), region = 47  ;;  %s1147_s27 = sshll.u32 (!%p236_p8), %s242_s25, 8 }
  0x27   : > { %p277_p9 = scmp.lt.s32.totalorder (!%p236_p8), %s1148_s26, 127  ;;  %s1646_s4 = scalar_lea.vmem (!%p236_p8), [#allocation3], %s1147_s27 }
  0x28   : > { %p1150_p10 = scmp.ne.s32.totalorder (!%p236_p8), %s1500_s11, 0 }
  0x2d   : > { %s1787_s26 = smov (!%p277_p9, %s1148_s26), 127  ;;  %298 = sbr.rel (%p1150_p10) target bundleno = 55 (0x37), region = 55 }
  0x2e   : > { %s1149_s28 = sshll.u32 %s1787_s26, 2  ;;  %v1510_v32 = vmov (!%p1150_p10), 0.0  }
  0x2f   : > { %s1644_s3 = scalar_lea.vmem %s1778_s1, %s1149_s28  ;;  %299 = vst [vmem:[#allocation2] sm:$0xff] (!%p1150_p10), %v1510_v32  ;;  %300 = vst [vmem:[#allocation2 + $0x8] sm:$0xff] (!%p1150_p10), %v1510_v32 }
  0x30   : > { %301 = vst [vmem:[#allocation2 + $0x10] sm:$0xff] (!%p1150_p10), %v1510_v32  ;;  %302 = vst [vmem:[#allocation2 + $0x18] sm:$0xff] (!%p1150_p10), %v1510_v32 }
  0x31   : > { %303 = vst [vmem:[#allocation2 + $0x20] sm:$0xff] (!%p1150_p10), %v1510_v32  ;;  %304 = vst [vmem:[#allocation2 + $0x28] sm:$0xff] (!%p1150_p10), %v1510_v32 }
  0x32   : > { %305 = vst [vmem:[#allocation2 + $0x30] sm:$0xff] (!%p1150_p10), %v1510_v32  ;;  %306 = vst [vmem:[#allocation2 + $0x38] sm:$0xff] (!%p1150_p10), %v1510_v32 }
  0x33   : > { %307 = vst [vmem:[#allocation2 + $0x40] sm:$0xff] (!%p1150_p10), %v1510_v32  ;;  %308 = vst [vmem:[#allocation2 + $0x48] sm:$0xff] (!%p1150_p10), %v1510_v32 }
  0x34   : > { %309 = vst [vmem:[#allocation2 + $0x50] sm:$0xff] %v1510_v32  ;;  %310 = vst [vmem:[#allocation2 + $0x58] sm:$0xff] %v1510_v32 }
  0x35   : > { %311 = vst [vmem:[#allocation2 + $0x60] sm:$0xff] %v1510_v32  ;;  %312 = vst [vmem:[#allocation2 + $0x68] sm:$0xff] %v1510_v32 }
  0x36   : > { %313 = vst [vmem:[#allocation2 + $0x70] sm:$0xff] %v1510_v32  ;;  %314 = vst [vmem:[#allocation2 + $0x78] sm:$0xff] %v1510_v32 }
  0x37 PF: > { %v1390_v33 = vld [vmem:[%s1644_s3 + $0x40] sm:$0xff]   ;;  %v1394_v37 = vld [vmem:[%s1644_s3 + $0x48] sm:$0xff]   ;;  %v1398_v41 = vld [vmem:[%s1644_s3 + $0x50] sm:$0xff]   ;;  %p1215_p11 = scmp.ne.s32.totalorder %s1500_s11, 1 }
  0x38   : > { %v1391_v34 = vld [vmem:[%s1644_s3 + $0xc0] sm:$0xff]   ;;  %1221 = vmatprep.subr.bf16.mxu0 %v1390_v33  ;;  %v1395_v38 = vld [vmem:[%s1644_s3 + $0xc8] sm:$0xff]   ;;  %v1399_v42 = vld [vmem:[%s1644_s3 + $0xd0] sm:$0xff]  }
  0x39   : > { %v1392_v35 = vld [vmem:[%s1644_s3] sm:$0xff]   ;;  %1285 = vmatprep.subr.bf16.mxu1 %v1391_v34  ;;  %v1396_v39 = vld [vmem:[%s1644_s3 + $0x8] sm:$0xff]   ;;  %v1400_v43 = vld [vmem:[%s1644_s3 + $0x10] sm:$0xff]  }
  0x3a   : > { %v1393_v36 = vld [vmem:[%s1644_s3 + $0x80] sm:$0xff]   ;;  %1222 = vmatpush3.bf16.msra.mxu0 %v1392_v35  ;;  %v1397_v40 = vld [vmem:[%s1644_s3 + $0x88] sm:$0xff]   ;;  %v1401_v44 = vld [vmem:[%s1644_s3 + $0x90] sm:$0xff]  }
  0x3b   : > { %1286 = vmatpush3.bf16.msra.mxu1 %v1393_v36  ;;  %1223 = vmatprep.subr.bf16.mxu0 %v1394_v37  ;;  %v1402_v45 = vld [vmem:[%s1644_s3 + $0x58] sm:$0xff]   ;;  %v1406_v49 = vld [vmem:[%s1644_s3 + $0x60] sm:$0xff]   ;;  %v1410_v53 = vld [vmem:[%s1644_s3 + $0x68] sm:$0xff]  }
  0x3c   : > { %1287 = vmatprep.subr.bf16.mxu1 %v1395_v38  ;;  %v1403_v46 = vld [vmem:[%s1644_s3 + $0xd8] sm:$0xff]   ;;  %v1407_v50 = vld [vmem:[%s1644_s3 + $0xe0] sm:$0xff]   ;;  %v1411_v54 = vld [vmem:[%s1644_s3 + $0xe8] sm:$0xff]  }
  0x3d   : > { %v1404_v47 = vld [vmem:[%s1644_s3 + $0x18] sm:$0xff]   ;;  %v1408_v51 = vld [vmem:[%s1644_s3 + $0x20] sm:$0xff]   ;;  %v1412_v55 = vld [vmem:[%s1644_s3 + $0x28] sm:$0xff]  }
  0x3e   : > { %1224 = vmatpush3.bf16.msra.mxu0 %v1396_v39  ;;  %v1405_v48 = vld [vmem:[%s1644_s3 + $0x98] sm:$0xff]   ;;  %v1409_v52 = vld [vmem:[%s1644_s3 + $0xa0] sm:$0xff]   ;;  %v1413_v56 = vld [vmem:[%s1644_s3 + $0xa8] sm:$0xff]  }
  0x3f   : > { %1288 = vmatpush3.bf16.msra.mxu1 %v1397_v40  ;;  %1225 = vmatprep.subr.bf16.mxu0 %v1398_v41  ;;  %v1414_v57 = vld [vmem:[%s1644_s3 + $0x70] sm:$0xff]   ;;  %v1418_v61 = vld [vmem:[%s1644_s3 + $0x78] sm:$0xff]  }
  0x40   : > { %1289 = vmatprep.subr.bf16.mxu1 %v1399_v42  ;;  %v1415_v58 = vld [vmem:[%s1644_s3 + $0xf0] sm:$0xff]   ;;  %v1419_v62 = vld [vmem:[%s1644_s3 + $0xf8] sm:$0xff]   ;;  %v315_v42 = vld [vmem:[#allocation2] sm:$0xff] }
  0x41   : > { %v1416_v59 = vld [vmem:[%s1644_s3 + $0x30] sm:$0xff]   ;;  %v1420_v63 = vld [vmem:[%s1644_s3 + $0x38] sm:$0xff]  }
  0x42   : > { %1226 = vmatpush3.bf16.msra.mxu0 %v1400_v43  ;;  %v1417_v60 = vld [vmem:[%s1644_s3 + $0xb0] sm:$0xff]   ;;  %v1421_v0 = vld [vmem:[%s1644_s3 + $0xb8] sm:$0xff]  }
  0x43   : > { %1290 = vmatpush3.bf16.msra.mxu1 %v1401_v44  ;;  %1227 = vmatprep.subr.bf16.mxu0 %v1402_v45  ;;  %v1422_v1 = vld [vmem:[%s1646_s4] ss:$16 sps:$4 sm:$0xff]   ;;  %v1424_v2 = vld [vmem:[%s1646_s4 + $0x4] ss:$16 sps:$4 sm:$0xff]   ;;  %v1425_v3 = vld [vmem:[%s1646_s4 + $0x8] ss:$16 sps:$4 sm:$0xff]  }
  0x44   : > { %1291 = vmatprep.subr.bf16.mxu1 %v1403_v46  ;;  %v1427_v4 = vld [vmem:[%s1646_s4 + $0xc] ss:$16 sps:$4 sm:$0xff]   ;;  %811 = vmatprep.mubr.bf16.mxu0 %v1424_v2  ;;  %v1428_v5 = vld [vmem:[%s1646_s4 + $0x24] ss:$16 sps:$4 sm:$0xff]   ;;  %v1432_v7 = vld [vmem:[%s1646_s4 + $0x20] ss:$16 sps:$4 sm:$0xff]  }
  0x45   : > { %908 = vmatprep.mubr.bf16.mxu1 %v1427_v4  ;;  %v1430_v6 = vld [vmem:[%s1646_s4 + $0x2c] ss:$16 sps:$4 sm:$0xff]   ;;  %v1433_v8 = vld [vmem:[%s1646_s4 + $0x28] ss:$16 sps:$4 sm:$0xff]   ;;  %v1434_v9 = vld [vmem:[%s1646_s4 + $0x44] ss:$16 sps:$4 sm:$0xff]  }
  0x46   : > { %1228 = vmatpush3.bf16.msra.mxu0 %v1404_v47  ;;  %v1436_v10 = vld [vmem:[%s1646_s4 + $0x4c] ss:$16 sps:$4 sm:$0xff]   ;;  %v1438_v11 = vld [vmem:[%s1646_s4 + $0x40] ss:$16 sps:$4 sm:$0xff]   ;;  %v1439_v12 = vld [vmem:[%s1646_s4 + $0x48] ss:$16 sps:$4 sm:$0xff]  }
  0x47   : > { %1292 = vmatpush3.bf16.msra.mxu1 %v1405_v48  ;;  %1229 = vmatprep.subr.bf16.mxu0 %v1406_v49  ;;  %v1440_v13 = vld [vmem:[%s1646_s4 + $0x64] ss:$16 sps:$4 sm:$0xff]   ;;  %v1442_v14 = vld [vmem:[%s1646_s4 + $0x6c] ss:$16 sps:$4 sm:$0xff]   ;;  %v1444_v15 = vld [vmem:[%s1646_s4 + $0x60] ss:$16 sps:$4 sm:$0xff]  }
  0x48   : > { %1293 = vmatprep.subr.bf16.mxu1 %v1407_v50  ;;  %v1445_v16 = vld [vmem:[%s1646_s4 + $0x68] ss:$16 sps:$4 sm:$0xff]   ;;  %v1446_v17 = vld [vmem:[%s1646_s4 + $0x84] ss:$16 sps:$4 sm:$0xff]   ;;  %v1448_v18 = vld [vmem:[%s1646_s4 + $0x8c] ss:$16 sps:$4 sm:$0xff]  }
  0x49   : > { %v1450_v19 = vld [vmem:[%s1646_s4 + $0x80] ss:$16 sps:$4 sm:$0xff]   ;;  %v1451_v20 = vld [vmem:[%s1646_s4 + $0x88] ss:$16 sps:$4 sm:$0xff]   ;;  %v1452_v21 = vld [vmem:[%s1646_s4 + $0xa4] ss:$16 sps:$4 sm:$0xff]  }
  0x4a   : > { %1230 = vmatpush3.bf16.msra.mxu0 %v1408_v51  ;;  %v1454_v22 = vld [vmem:[%s1646_s4 + $0xac] ss:$16 sps:$4 sm:$0xff]   ;;  %v1456_v23 = vld [vmem:[%s1646_s4 + $0xa0] ss:$16 sps:$4 sm:$0xff]   ;;  %v1457_v24 = vld [vmem:[%s1646_s4 + $0xa8] ss:$16 sps:$4 sm:$0xff]  }
  0x4b   : > { %1294 = vmatpush3.bf16.msra.mxu1 %v1409_v52  ;;  %1231 = vmatprep.subr.bf16.mxu0 %v1410_v53  ;;  %v1458_v25 = vld [vmem:[%s1646_s4 + $0xc4] ss:$16 sps:$4 sm:$0xff]   ;;  %v1460_v26 = vld [vmem:[%s1646_s4 + $0xcc] ss:$16 sps:$4 sm:$0xff]   ;;  %v1462_v27 = vld [vmem:[%s1646_s4 + $0xc0] ss:$16 sps:$4 sm:$0xff]  }
  0x4c   : > { %1295 = vmatprep.subr.bf16.mxu1 %v1411_v54  ;;  %v1463_v28 = vld [vmem:[%s1646_s4 + $0xc8] ss:$16 sps:$4 sm:$0xff]   ;;  %v1464_v29 = vld [vmem:[%s1646_s4 + $0xe4] ss:$16 sps:$4 sm:$0xff]   ;;  %v1466_v30 = vld [vmem:[%s1646_s4 + $0xec] ss:$16 sps:$4 sm:$0xff]  }
  0x4d   : > { %v1468_v31 = vld [vmem:[%s1646_s4 + $0xe0] ss:$16 sps:$4 sm:$0xff]   ;;  %v1469_v32 = vld [vmem:[%s1646_s4 + $0xe8] ss:$16 sps:$4 sm:$0xff]  }
  0x4e   : > { %1232 = vmatpush3.bf16.msra.mxu0 %v1412_v55  ;;  %v316_v47 = vld [vmem:[#allocation2 + $0x8] sm:$0xff] }
  0x4f   : > { %1296 = vmatpush3.bf16.msra.mxu1 %v1413_v56  ;;  %1233 = vmatprep.subr.bf16.mxu0 %v1414_v57 }
  0x50   : > { %1297 = vmatprep.subr.bf16.mxu1 %v1415_v58 }
  0x52   : > { %1234 = vmatpush3.bf16.msra.mxu0 %v1416_v59 }
  0x53   : > { %1298 = vmatpush3.bf16.msra.mxu1 %v1417_v60  ;;  %1235 = vmatprep.subr.bf16.mxu0 %v1418_v61  ;;  %v317_v60 = vld [vmem:[#allocation2 + $0x10] sm:$0xff] }
  0x54   : > { %1299 = vmatprep.subr.bf16.mxu1 %v1419_v62 }
  0x56   : > { %1236 = vmatpush3.bf16.msra.mxu0 %v1420_v63 }
  0x57   : > { %1300 = vmatpush3.bf16.msra.mxu1 %v1421_v0 }
  0x59   : > { %812 = vmatmul.mubr.bf16.vlgmr.msra.gmra.mrb[0].mxu0 %v1422_v1  ;;  %v318_v1 = vld [vmem:[#allocation2 + $0x18] sm:$0xff] }
  0x5a   : > { %909 = vmatmul.mubr.bf16.vlgmr.msra.gmra.mrb[0].mxu1 %v1425_v3  ;;  %819 = vmatprep.mubr.bf16.mxu0 %v1428_v5 }
  0x5b   : > { %916 = vmatprep.mubr.bf16.mxu1 %v1430_v6 }
  0x61   : > { %820 = vmatmul.mubr.bf16.gmra.mrb[4].mxu0 %v1432_v7 }
  0x62   : > { %917 = vmatmul.mubr.bf16.gmra.mrb[4].mxu1 %v1433_v8  ;;  %827 = vmatprep.mubr.bf16.mxu0 %v1434_v9 }
  0x63   : > { %924 = vmatprep.mubr.bf16.mxu1 %v1436_v10 }
  0x69   : > { %828 = vmatmul.mubr.bf16.gmra.mrb[8].mxu0 %v1438_v11 }
  0x6a   : > { %925 = vmatmul.mubr.bf16.gmra.mrb[8].mxu1 %v1439_v12  ;;  %835 = vmatprep.mubr.bf16.mxu0 %v1440_v13 }
  0x6b   : > { %932 = vmatprep.mubr.bf16.mxu1 %v1442_v14  ;;  %v319_v14 = vld [vmem:[#allocation2 + $0x20] sm:$0xff] }
  0x71   : > { %836 = vmatmul.mubr.bf16.gmra.mrb[12].mxu0 %v1444_v15 }
  0x72   : > { %933 = vmatmul.mubr.bf16.gmra.mrb[12].mxu1 %v1445_v16  ;;  %843 = vmatprep.mubr.bf16.mxu0 %v1446_v17 }
  0x73   : > { %940 = vmatprep.mubr.bf16.mxu1 %v1448_v18 }
  0x79   : > { %844 = vmatmul.mubr.bf16.gmra.mrb[16].mxu0 %v1450_v19  ;;  %v320_v19 = vld [vmem:[#allocation2 + $0x28] sm:$0xff] }
  0x7a   : > { %941 = vmatmul.mubr.bf16.gmra.mrb[16].mxu1 %v1451_v20  ;;  %851 = vmatprep.mubr.bf16.mxu0 %v1452_v21 }
  0x7b   : > { %948 = vmatprep.mubr.bf16.mxu1 %v1454_v22 }
  0x81   : > { %852 = vmatmul.mubr.bf16.gmra.mrb[20].mxu0 %v1456_v23 }
  0x82   : > { %949 = vmatmul.mubr.bf16.gmra.mrb[20].mxu1 %v1457_v24  ;;  %859 = vmatprep.mubr.bf16.mxu0 %v1458_v25 }
  0x83   : > { %956 = vmatprep.mubr.bf16.mxu1 %v1460_v26 }
  0x89   : > { %860 = vmatmul.mubr.bf16.gmra.mrb[24].mxu0 %v1462_v27 }
  0x8a   : > { %957 = vmatmul.mubr.bf16.gmra.mrb[24].mxu1 %v1463_v28  ;;  %867 = vmatprep.mubr.bf16.mxu0 %v1464_v29 }
  0x8b   : > { %964 = vmatprep.mubr.bf16.mxu1 %v1466_v30 }
  0x91   : > { %868 = vmatmul.mubr.bf16.gmra.mrb[28].mxu0 %v1468_v31 }
  0x92   : > { %965 = vmatmul.mubr.bf16.gmra.mrb[28].mxu1 %v1469_v32  ;;  %v321_v32 = vld [vmem:[#allocation2 + $0x30] sm:$0xff] }
 0x12c   : > { %v1237_v33 = vpop.f32.mrb[0].mxu0 }
 0x12d   : > { %v1301_v34 = vpop.f32.mrb[0].mxu1  ;;  %v1238_v35 = vpop.f32.mrb[1].mxu0 }
 0x12e   : > { %v1239_v36 = vadd.f32 %v1238_v35, %v1237_v33  ;;  %v1302_v37 = vpop.f32.mrb[1].mxu1  ;;  %v1240_v38 = vpop.f32.mrb[2].mxu0 }
 0x12f   : > { %v1303_v39 = vadd.f32 %v1302_v37, %v1301_v34  ;;  %v1304_v40 = vpop.f32.mrb[2].mxu1  ;;  %v1241_v41 = vpop.f32.mrb[3].mxu0  ;;  %v322_v37 = vld [vmem:[#allocation2 + $0x38] sm:$0xff] }
 0x130   : > { %v1242_v43 = vadd.f32 %v1241_v41, %v1240_v38  ;;  %v1305_v44 = vpop.f32.mrb[3].mxu1 }
 0x131   : > { %v911_v45 = vadd.f32 %v1303_v39, %v1239_v36  ;;  %v1306_v46 = vadd.f32 %v1305_v44, %v1304_v40 }
 0x133   : > { %v973_v48 = vadd.f32 %v911_v45, %v315_v42  ;;  %v914_v49 = vadd.f32 %v1306_v46, %v1242_v43 }
 0x134   : > { %v1243_v50 = vpop.f32.mrb[4].mxu0 }
 0x135   : > { %989 = vst [vmem:[#allocation2] sm:$0xff] %v973_v48  ;;  %v974_v51 = vadd.f32 %v914_v49, %v316_v47  ;;  %v1307_v52 = vpop.f32.mrb[4].mxu1  ;;  %v1244_v53 = vpop.f32.mrb[5].mxu0 }
 0x136   : > { %v1245_v54 = vadd.f32 %v1244_v53, %v1243_v50  ;;  %v1308_v55 = vpop.f32.mrb[5].mxu1  ;;  %v1246_v56 = vpop.f32.mrb[6].mxu0  ;;  %v323_v50 = vld [vmem:[#allocation2 + $0x40] sm:$0xff] }
 0x137   : > { %990 = vst [vmem:[#allocation2 + $0x8] sm:$0xff] %v974_v51  ;;  %v1309_v57 = vadd.f32 %v1308_v55, %v1307_v52  ;;  %v1310_v58 = vpop.f32.mrb[6].mxu1  ;;  %v1247_v59 = vpop.f32.mrb[7].mxu0  ;;  %v324_v55 = vld [vmem:[#allocation2 + $0x48] sm:$0xff] }
 0x138   : > { %v1248_v61 = vadd.f32 %v1247_v59, %v1246_v56  ;;  %v1311_v62 = vpop.f32.mrb[7].mxu1 }
 0x139   : > { %v919_v63 = vadd.f32 %v1309_v57, %v1245_v54  ;;  %v1312_v0 = vadd.f32 %v1311_v62, %v1310_v58 }
 0x13b   : > { %v975_v2 = vadd.f32 %v919_v63, %v317_v60  ;;  %v922_v3 = vadd.f32 %v1312_v0, %v1248_v61 }
 0x13c   : > { %v1249_v4 = vpop.f32.mrb[8].mxu0 }
 0x13d   : > { %991 = vst [vmem:[#allocation2 + $0x10] sm:$0xff] %v975_v2  ;;  %v976_v5 = vadd.f32 %v922_v3, %v318_v1  ;;  %v1313_v6 = vpop.f32.mrb[8].mxu1  ;;  %v1250_v7 = vpop.f32.mrb[9].mxu0 }
 0x13e   : > { %v1251_v8 = vadd.f32 %v1250_v7, %v1249_v4  ;;  %v1314_v9 = vpop.f32.mrb[9].mxu1  ;;  %v1252_v10 = vpop.f32.mrb[10].mxu0  ;;  %v325_v4 = vld [vmem:[#allocation2 + $0x50] sm:$0xff] }
 0x13f   : > { %992 = vst [vmem:[#allocation2 + $0x18] sm:$0xff] %v976_v5  ;;  %v1315_v11 = vadd.f32 %v1314_v9, %v1313_v6  ;;  %v1316_v12 = vpop.f32.mrb[10].mxu1  ;;  %v1253_v13 = vpop.f32.mrb[11].mxu0  ;;  %v326_v9 = vld [vmem:[#allocation2 + $0x58] sm:$0xff] }
 0x140   : > { %v1254_v15 = vadd.f32 %v1253_v13, %v1252_v10  ;;  %v1317_v16 = vpop.f32.mrb[11].mxu1 }
 0x141   : > { %v927_v17 = vadd.f32 %v1315_v11, %v1251_v8  ;;  %v1318_v18 = vadd.f32 %v1317_v16, %v1316_v12 }
 0x143   : > { %v977_v20 = vadd.f32 %v927_v17, %v319_v14  ;;  %v930_v21 = vadd.f32 %v1318_v18, %v1254_v15 }
 0x144   : > { %v1255_v22 = vpop.f32.mrb[12].mxu0 }
 0x145   : > { %993 = vst [vmem:[#allocation2 + $0x20] sm:$0xff] %v977_v20  ;;  %v978_v23 = vadd.f32 %v930_v21, %v320_v19  ;;  %v1319_v24 = vpop.f32.mrb[12].mxu1  ;;  %v1256_v25 = vpop.f32.mrb[13].mxu0 }
 0x146   : > { %v1257_v26 = vadd.f32 %v1256_v25, %v1255_v22  ;;  %v1320_v27 = vpop.f32.mrb[13].mxu1  ;;  %v1258_v28 = vpop.f32.mrb[14].mxu0  ;;  %v327_v22 = vld [vmem:[#allocation2 + $0x60] sm:$0xff] }
 0x147   : > { %994 = vst [vmem:[#allocation2 + $0x28] sm:$0xff] %v978_v23  ;;  %v1321_v29 = vadd.f32 %v1320_v27, %v1319_v24  ;;  %v1322_v30 = vpop.f32.mrb[14].mxu1  ;;  %v1259_v31 = vpop.f32.mrb[15].mxu0  ;;  %v328_v27 = vld [vmem:[#allocation2 + $0x68] sm:$0xff] }
 0x148   : > { %v1260_v33 = vadd.f32 %v1259_v31, %v1258_v28  ;;  %v1323_v34 = vpop.f32.mrb[15].mxu1 }
 0x149   : > { %v935_v35 = vadd.f32 %v1321_v29, %v1257_v26  ;;  %v1324_v36 = vadd.f32 %v1323_v34, %v1322_v30 }
 0x14b   : > { %v979_v38 = vadd.f32 %v935_v35, %v321_v32  ;;  %v938_v39 = vadd.f32 %v1324_v36, %v1260_v33 }
 0x14c   : > { %v1261_v40 = vpop.f32.mrb[16].mxu0 }
 0x14d   : > { %995 = vst [vmem:[#allocation2 + $0x30] sm:$0xff] %v979_v38  ;;  %v980_v41 = vadd.f32 %v938_v39, %v322_v37  ;;  %v1325_v42 = vpop.f32.mrb[16].mxu1  ;;  %v1262_v43 = vpop.f32.mrb[17].mxu0 }
 0x14e   : > { %v1263_v44 = vadd.f32 %v1262_v43, %v1261_v40  ;;  %v1326_v45 = vpop.f32.mrb[17].mxu1  ;;  %v1264_v46 = vpop.f32.mrb[18].mxu0  ;;  %v329_v40 = vld [vmem:[#allocation2 + $0x70] sm:$0xff] }
 0x14f   : > { %996 = vst [vmem:[#allocation2 + $0x38] sm:$0xff] %v980_v41  ;;  %v1327_v47 = vadd.f32 %v1326_v45, %v1325_v42  ;;  %v1328_v48 = vpop.f32.mrb[18].mxu1  ;;  %v1265_v49 = vpop.f32.mrb[19].mxu0  ;;  %v330_v45 = vld [vmem:[#allocation2 + $0x78] sm:$0xff] }
 0x150   : > { %v1266_v51 = vadd.f32 %v1265_v49, %v1264_v46  ;;  %v1329_v52 = vpop.f32.mrb[19].mxu1  ;;  %v1009_v49 = vld [vmem:[#allocation2] sm:$0xff] (!%p1215_p11) }
 0x151   : > { %v943_v53 = vadd.f32 %v1327_v47, %v1263_v44  ;;  %v1330_v54 = vadd.f32 %v1329_v52, %v1328_v48  ;;  %1025 = vst [vmem:[%s1779_s2] sm:$0xff] (!%p1215_p11), %v1009_v49  ;;  %v1012_v52 = vld [vmem:[#allocation2 + $0x18] sm:$0xff] (!%p1215_p11) }
 0x152   : > { %1028 = vst [vmem:[%s1779_s2 + $0x18] sm:$0xff] (!%p1215_p11), %v1012_v52 }
 0x153   : > { %v981_v56 = vadd.f32 %v943_v53, %v323_v50  ;;  %v946_v57 = vadd.f32 %v1330_v54, %v1266_v51  ;;  %v1010_v50 = vld [vmem:[#allocation2 + $0x8] sm:$0xff] (!%p1215_p11)  ;;  %v1011_v51 = vld [vmem:[#allocation2 + $0x10] sm:$0xff] (!%p1215_p11)  ;;  %v1013_v53 = vld [vmem:[#allocation2 + $0x20] sm:$0xff] (!%p1215_p11) }
 0x154   : > { %v1267_v58 = vpop.f32.mrb[20].mxu0  ;;  %1026 = vst [vmem:[%s1779_s2 + $0x8] sm:$0xff] (!%p1215_p11), %v1010_v50  ;;  %1027 = vst [vmem:[%s1779_s2 + $0x10] sm:$0xff] (!%p1215_p11), %v1011_v51  ;;  %v1014_v54 = vld [vmem:[#allocation2 + $0x28] sm:$0xff] (!%p1215_p11) }
 0x155   : > { %997 = vst [vmem:[#allocation2 + $0x40] sm:$0xff] %v981_v56  ;;  %v982_v59 = vadd.f32 %v946_v57, %v324_v55  ;;  %v1331_v60 = vpop.f32.mrb[20].mxu1  ;;  %v1268_v61 = vpop.f32.mrb[21].mxu0  ;;  %1029 = vst [vmem:[%s1779_s2 + $0x20] sm:$0xff] (!%p1215_p11), %v1013_v53  ;;  %v1015_v55 = vld [vmem:[#allocation2 + $0x30] sm:$0xff] (!%p1215_p11) }
 0x156   : > { %v1269_v62 = vadd.f32 %v1268_v61, %v1267_v58  ;;  %v1332_v63 = vpop.f32.mrb[21].mxu1  ;;  %v1270_v0 = vpop.f32.mrb[22].mxu0  ;;  %1030 = vst [vmem:[%s1779_s2 + $0x28] sm:$0xff] (!%p1215_p11), %v1014_v54  ;;  %v1016_v56 = vld [vmem:[#allocation2 + $0x38] sm:$0xff] (!%p1215_p11)  ;;  %1031 = vst [vmem:[%s1779_s2 + $0x30] sm:$0xff] (!%p1215_p11), %v1015_v55 }
 0x157   : > { %998 = vst [vmem:[#allocation2 + $0x48] sm:$0xff] %v982_v59  ;;  %v1333_v1 = vadd.f32 %v1332_v63, %v1331_v60  ;;  %v1334_v2 = vpop.f32.mrb[22].mxu1  ;;  %v1271_v3 = vpop.f32.mrb[23].mxu0  ;;  %1032 = vst [vmem:[%s1779_s2 + $0x38] sm:$0xff] (!%p1215_p11), %v1016_v56 }
 0x158   : > { %v1272_v5 = vadd.f32 %v1271_v3, %v1270_v0  ;;  %v1335_v6 = vpop.f32.mrb[23].mxu1 }
 0x159   : > { %v951_v7 = vadd.f32 %v1333_v1, %v1269_v62  ;;  %v1336_v8 = vadd.f32 %v1335_v6, %v1334_v2 }
 0x15b   : > { %v983_v10 = vadd.f32 %v951_v7, %v325_v4  ;;  %v954_v11 = vadd.f32 %v1336_v8, %v1272_v5 }
 0x15c   : > { %v1273_v12 = vpop.f32.mrb[24].mxu0  ;;  %v1017_v57 = vld [vmem:[#allocation2 + $0x40] sm:$0xff] (!%p1215_p11) }
 0x15d   : > { %999 = vst [vmem:[#allocation2 + $0x50] sm:$0xff] %v983_v10  ;;  %v984_v13 = vadd.f32 %v954_v11, %v326_v9  ;;  %v1337_v14 = vpop.f32.mrb[24].mxu1  ;;  %v1274_v15 = vpop.f32.mrb[25].mxu0  ;;  %1033 = vst [vmem:[%s1779_s2 + $0x40] sm:$0xff] (!%p1215_p11), %v1017_v57 }
 0x15e   : > { %v1275_v16 = vadd.f32 %v1274_v15, %v1273_v12  ;;  %v1338_v17 = vpop.f32.mrb[25].mxu1  ;;  %v1276_v18 = vpop.f32.mrb[26].mxu0  ;;  %v1018_v58 = vld [vmem:[#allocation2 + $0x48] sm:$0xff] (!%p1215_p11) }
 0x15f   : > { %1000 = vst [vmem:[#allocation2 + $0x58] sm:$0xff] %v984_v13  ;;  %v1339_v19 = vadd.f32 %v1338_v17, %v1337_v14  ;;  %v1340_v20 = vpop.f32.mrb[26].mxu1  ;;  %v1277_v21 = vpop.f32.mrb[27].mxu0  ;;  %1034 = vst [vmem:[%s1779_s2 + $0x48] sm:$0xff] (!%p1215_p11), %v1018_v58 }
 0x160   : > { %v1278_v23 = vadd.f32 %v1277_v21, %v1276_v18  ;;  %v1341_v24 = vpop.f32.mrb[27].mxu1 }
 0x161   : > { %v959_v25 = vadd.f32 %v1339_v19, %v1275_v16  ;;  %v1342_v26 = vadd.f32 %v1341_v24, %v1340_v20 }
 0x163   : > { %v985_v28 = vadd.f32 %v959_v25, %v327_v22  ;;  %v962_v29 = vadd.f32 %v1342_v26, %v1278_v23 }
 0x164   : > { %v1279_v30 = vpop.f32.mrb[28].mxu0  ;;  %v1019_v59 = vld [vmem:[#allocation2 + $0x50] sm:$0xff] (!%p1215_p11) }
 0x165   : > { %1001 = vst [vmem:[#allocation2 + $0x60] sm:$0xff] %v985_v28  ;;  %v986_v31 = vadd.f32 %v962_v29, %v328_v27  ;;  %v1343_v32 = vpop.f32.mrb[28].mxu1  ;;  %v1280_v33 = vpop.f32.mrb[29].mxu0  ;;  %1035 = vst [vmem:[%s1779_s2 + $0x50] sm:$0xff] (!%p1215_p11), %v1019_v59 }
 0x166   : > { %v1281_v34 = vadd.f32 %v1280_v33, %v1279_v30  ;;  %v1344_v35 = vpop.f32.mrb[29].mxu1  ;;  %v1282_v36 = vpop.f32.mrb[30].mxu0  ;;  %v1020_v60 = vld [vmem:[#allocation2 + $0x58] sm:$0xff] (!%p1215_p11) }
 0x167   : > { %1002 = vst [vmem:[#allocation2 + $0x68] sm:$0xff] %v986_v31  ;;  %v1345_v37 = vadd.f32 %v1344_v35, %v1343_v32  ;;  %v1346_v38 = vpop.f32.mrb[30].mxu1  ;;  %v1283_v39 = vpop.f32.mrb[31].mxu0  ;;  %1036 = vst [vmem:[%s1779_s2 + $0x58] sm:$0xff] (!%p1215_p11), %v1020_v60 }
 0x168   : > { %v1284_v41 = vadd.f32 %v1283_v39, %v1282_v36  ;;  %v1347_v42 = vpop.f32.mrb[31].mxu1 }
 0x169   : > { %v967_v43 = vadd.f32 %v1345_v37, %v1281_v34  ;;  %v1348_v44 = vadd.f32 %v1347_v42, %v1346_v38  ;;  %1008 = sbr.rel (%p1215_p11) target bundleno = 376 (0x178), region = 59 }
 0x16b   : > { %v987_v46 = vadd.f32 %v967_v43, %v329_v40  ;;  %v970_v47 = vadd.f32 %v1348_v44, %v1284_v41 }
 0x16c   : > { %v1021_v61 = vld [vmem:[#allocation2 + $0x60] sm:$0xff] (!%p1215_p11) }
 0x16d   : > { %1003 = vst [vmem:[#allocation2 + $0x70] sm:$0xff] %v987_v46  ;;  %v988_v48 = vadd.f32 %v970_v47, %v330_v45  ;;  %1037 = vst [vmem:[%s1779_s2 + $0x60] sm:$0xff] (!%p1215_p11), %v1021_v61 }
 0x16e   : > { %v1022_v62 = vld [vmem:[#allocation2 + $0x68] sm:$0xff] (!%p1215_p11) }
 0x16f   : > { %1004 = vst [vmem:[#allocation2 + $0x78] sm:$0xff] %v988_v48  ;;  %1038 = vst [vmem:[%s1779_s2 + $0x68] sm:$0xff] (!%p1215_p11), %v1022_v62 }
 0x174   : > { %v1023_v63 = vld [vmem:[#allocation2 + $0x70] sm:$0xff] }
 0x175   : > { %1039 = vst [vmem:[%s1779_s2 + $0x70] sm:$0xff] %v1023_v63 }
 0x176   : > { %v1024_v0 = vld [vmem:[#allocation2 + $0x78] sm:$0xff] }
 0x177   : > { %1040 = vst [vmem:[%s1779_s2 + $0x78] sm:$0xff] %v1024_v0 }
 0x178 PF: > { %s12_s13 = sadd.s32 1, %s1508_s13   ;;  %s1780_s9 = smov %s1496_s10 }
 0x179   : > { %p9_p12 = scmp.ge.s32.totalorder %s12_s13, 4   ;;  %s1781_s10 = smov %s1561_s17 }
 0x17a   : > { %s1782_s11 = smov %s1504_s12  ;;  %s1783_s12 = smov %s1785_s14 }
 0x17b   :  { %11 = sbr.rel (!%p9_p12) target bundleno = 3 (0x3), region = 97 }

// kernel: ud_forward.6
= control target key start
LH: loop header
LB: loop body
LE: loop exit
PB: predicated region body
PF: predicated region fallthrough
CT: control target
= control target key end

     0   :  { %s335_s6 = smov 0   ;;  %s337_s7 = smov 0   ;;  %s372_s0 = inlined_call_operand.vmem [shape: f32[2,64,128], index: 0, kind: input, shape index: {}]   ;;  %s373_s1 = inlined_call_operand.vmem [shape: f32[2,2,128], index: 1, kind: output, shape index: {}]  }
   0x1   :  { %s339_s8 = smov 0  }
   0x2 LB: > { %s23_s9 = sadd.s32 1, %s319_s7  ;;  %p270_p0 = scmp.ge.s32.totalorder %s323_s8, 1  ;;  %s323_s8 = sphi %s339_s8, %s11_s8   ;;  %s319_s7 = sphi %s337_s7, %s375_s7   ;;  %s315_s6 = sphi %s335_s6, %s374_s6  }
   0x3   : > { %p25_p1 = scmp.ge.s32.totalorder %s23_s9, 2  ;;  %p106_p2 = scmp.lt.s32.totalorder %s323_s8, 3 }
   0x5   : > { %s377_s9 = smov (%p25_p1, %s23_s9), 0  ;;  %p107_p3 = pnand %p270_p0, %p106_p2 }
   0x6   : > { %p130_p4 = scmp.lt.s32.totalorder (!%p107_p3), %s315_s6, 1  ;;  %vm185_vm0 = vcmask (!%p107_p3), 1040384  }
   0x7   : > { %110 = sbr.rel (%p107_p3) target bundleno = 48 (0x30), region = 24 }
   0xe   : > { %s379_s6 = smov (!%p130_p4, %s315_s6), 1 }
   0xf   : > { %s276_s10 = sshll.u32 %s379_s6, 6  ;;  %s273_s14 = sshll.u32 %s379_s6, 1 }
  0x10   : > { %s137_s13 = scalar_lea.vmem %s372_s0, %s276_s10  ;;  %s142_s17 = scalar_lea.vmem %s373_s1, %s273_s14 }
  0x11   : > { %v143_v0 = vld [vmem:[%s137_s13] sm:$0xff]  ;;  %v144_v1 = vld [vmem:[%s137_s13 + $0x8] sm:$0xff]  ;;  %v145_v2 = vld [vmem:[%s137_s13 + $0x10] sm:$0xff] }
  0x12   : > { %v146_v3 = vld [vmem:[%s137_s13 + $0x18] sm:$0xff]  ;;  %v151_v4 = vadd.f32 %v144_v1, %v143_v0  ;;  %v164_v5 = vmul.f32 %v143_v0, %v143_v0  ;;  %v165_v6 = vmul.f32 %v144_v1, %v144_v1  ;;  %v166_v7 = vmul.f32 %v145_v2, %v145_v2  ;;  %v147_v8 = vld [vmem:[%s137_s13 + $0x20] sm:$0xff]  ;;  %v148_v12 = vld [vmem:[%s137_s13 + $0x28] sm:$0xff] }
  0x13   : > { %v167_v10 = vmul.f32 %v146_v3, %v146_v3  ;;  %v168_v14 = vmul.f32 %v147_v8, %v147_v8  ;;  %v149_v16 = vld [vmem:[%s137_s13 + $0x30] sm:$0xff]  ;;  %v169_v18 = vmul.f32 %v148_v12, %v148_v12  ;;  %v150_v20 = vld [vmem:[%s137_s13 + $0x38] sm:$0xff] }
  0x14   : > { %v152_v9 = vadd.f32 %v151_v4, %v145_v2  ;;  %v172_v11 = vadd.f32 %v165_v6, %v164_v5  ;;  %v170_v22 = vmul.f32 %v149_v16, %v149_v16  ;;  %v171_v25 = vmul.f32 %v150_v20, %v150_v20 }
  0x16   : > { %v153_v13 = vadd.f32 %v152_v9, %v146_v3  ;;  %v173_v15 = vadd.f32 %v172_v11, %v166_v7 }
  0x18   : > { %v154_v17 = vadd.f32 %v153_v13, %v147_v8  ;;  %v174_v19 = vadd.f32 %v173_v15, %v167_v10 }
  0x1a   : > { %v155_v21 = vadd.f32 %v154_v17, %v148_v12  ;;  %v175_v23 = vadd.f32 %v174_v19, %v168_v14 }
  0x1c   : > { %v156_v24 = vadd.f32 %v155_v21, %v149_v16  ;;  %v176_v26 = vadd.f32 %v175_v23, %v169_v18 }
  0x1e   : > { %v157_v27 = vadd.f32 %v156_v24, %v150_v20  ;;  %v177_v28 = vadd.f32 %v176_v26, %v170_v22 }
  0x20   : > { %v158_v29 = vrot.slane %v157_v27, 4  ;;  %v178_v30 = vadd.f32 %v177_v28, %v171_v25 }
  0x22   : > { %v159_v31 = vadd.f32 %v158_v29, %v157_v27  ;;  %v179_v32 = vrot.slane %v178_v30, 4 }
  0x24   : > { %v160_v33 = vrot.slane %v159_v31, 2  ;;  %v180_v34 = vadd.f32 %v179_v32, %v178_v30 }
  0x26   : > { %v161_v35 = vadd.f32 %v160_v33, %v159_v31  ;;  %v181_v36 = vrot.slane %v180_v34, 2 }
  0x28   : > { %v162_v37 = vrot.slane %v161_v35, 1  ;;  %v182_v38 = vadd.f32 %v181_v36, %v180_v34 }
  0x2a   : > { %v163_v39 = vadd.f32 %v162_v37, %v161_v35  ;;  %v183_v40 = vrot.slane %v182_v38, 1 }
  0x2c   : > { %v184_v41 = vadd.f32 %v183_v40, %v182_v38 }
  0x2e   : > { %v186_v42 = vsel %vm185_vm0, %v163_v39, %v184_v41 }
  0x2f   : > { %191 = vst [vmem:[%s142_s17] sm:$0x3] %v186_v42 }
  0x30 PF: > { %s11_s8 = sadd.s32 1, %s323_s8   ;;  %s374_s6 = smov %s319_s7 }
  0x31   : > { %p8_p5 = scmp.ge.s32.totalorder %s11_s8, 4   ;;  %s375_s7 = smov %s377_s9 }
  0x33   :  { %10 = sbr.rel (!%p8_p5) target bundleno = 2 (0x2), region = 62 }

// kernel: ud_forward.7
= control target key start
LH: loop header
LB: loop body
LE: loop exit
PB: predicated region body
PF: predicated region fallthrough
CT: control target
= control target key end

     0   :  { %s440_s9 = smov 0   ;;  %s442_s10 = smov 0   ;;  %s484_s0 = inlined_call_operand.vmem [shape: f32[2,2,128], index: 0, kind: input, shape index: {}]   ;;  %s485_s1 = inlined_call_operand.vmem [shape: f32[2,64,128], index: 1, kind: input, shape index: {}]   ;;  %s486_s2 = inlined_call_operand.vmem [shape: f32[2,64,128], index: 2, kind: output, shape index: {}]  }
   0x1   :  { %s444_s11 = smov 0  }
   0x2 LB: > { %s24_s12 = sadd.s32 1, %s419_s10  ;;  %p365_p0 = scmp.ge.s32.totalorder %s423_s11, 1  ;;  %s423_s11 = sphi %s444_s11, %s12_s11   ;;  %s419_s10 = sphi %s442_s10, %s488_s10   ;;  %s415_s9 = sphi %s440_s9, %s487_s9  }
   0x3   : > { %p26_p1 = scmp.ge.s32.totalorder %s24_s12, 2  ;;  %p142_p2 = scmp.lt.s32.totalorder %s423_s11, 3 }
   0x5   : > { %s490_s12 = smov (%p26_p1, %s24_s12), 0  ;;  %p143_p3 = pnand %p365_p0, %p142_p2 }
   0x6   : > { %p176_p4 = scmp.lt.s32.totalorder (!%p143_p3), %s415_s9, 1  ;;  %v222_v6 = vlaneseq (!%p143_p3) }
   0x7   : > { %146 = sbr.rel (%p143_p3) target bundleno = 53 (0x35), region = 28 }
   0x8   : > { %v223_v7 = vshrl.u32 (!%p143_p3), %v222_v6, 7 }
   0xa   : > { %v224_v8 = vsub.s32 (!%p143_p3), 1, %v223_v7  ;;  %v236_v17 = vsub.s32 (!%p143_p3), 0, %v223_v7 }
   0xe   : > { %s492_s9 = smov (!%p176_p4, %s415_s9), 1 }
   0xf   : > { %s366_s13 = sshll.u32 %s492_s9, 1  ;;  %s373_s17 = sshll.u32 %s492_s9, 6 }
  0x10   : > { %s179_s16 = scalar_lea.vmem %s484_s0, %s366_s13  ;;  %s188_s20 = scalar_lea.vmem %s485_s1, %s373_s17 }
  0x11   : > { %v200_v0 = vld [vmem:[%s179_s16] sm:$0x3]  ;;  %v215_v12 = vld [vmem:[%s188_s20 + $0x8] sm:$0xff]  ;;  %v216_v13 = vld [vmem:[%s188_s20 + $0x10] sm:$0xff]  ;;  %s198_s23 = scalar_lea.vmem %s486_s2, %s373_s17 }
  0x12   : > { %v201_v1 = vmul.f32 0.015625, %v200_v0  ;;  %v214_v10 = vld [vmem:[%s188_s20] sm:$0xff]  ;;  %v217_v14 = vld [vmem:[%s188_s20 + $0x18] sm:$0xff]  ;;  %v219_v19 = vld [vmem:[%s188_s20 + $0x28] sm:$0xff] }
  0x13   : > { %v218_v18 = vld [vmem:[%s188_s20 + $0x20] sm:$0xff]  ;;  %v220_v20 = vld [vmem:[%s188_s20 + $0x30] sm:$0xff]  ;;  %v221_v21 = vld [vmem:[%s188_s20 + $0x38] sm:$0xff] }
  0x14   : > { %v202_v2 = vmul.f32 %v201_v1, %v201_v1  ;;  %v209_v9 = vsub.f32 0.0, %v201_v1 }
  0x16   : > { %v204_v3 = vrot.slane %v202_v2, 7 }
  0x18   : > { %v206_v4 = vsub.f32 %v201_v1, %v204_v3 }
  0x1a   : > { %v207_v5 = vadd.f32 1e-05, %v206_v4 }
  0x1c   : > { %399 = vrsqrt.f32 %v207_v5 }
  0x26   : > { %v400_v11 = vpop.eup %399 }
  0x27   : > { %v211_v15 = vrot.slane %v400_v11, 1  ;;  %v225_v16 = vrot.slane %v400_v11, %v224_v8 }
  0x29   : > { %v213_v22 = vmul.f32 %v211_v15, %v209_v9  ;;  %v226_v23 = vmul.f32 %v225_v16, %v214_v10  ;;  %v227_v24 = vmul.f32 %v225_v16, %v215_v12  ;;  %v228_v25 = vmul.f32 %v225_v16, %v216_v13 }
  0x2a   : > { %v229_v26 = vmul.f32 %v225_v16, %v217_v14  ;;  %v230_v27 = vmul.f32 %v225_v16, %v218_v18  ;;  %v231_v28 = vmul.f32 %v225_v16, %v219_v19  ;;  %v232_v29 = vmul.f32 %v225_v16, %v220_v20 }
  0x2b   : > { %v237_v30 = vrot.slane %v213_v22, %v236_v17  ;;  %v233_v31 = vmul.f32 %v225_v16, %v221_v21 }
  0x2d   : > { %v238_v32 = vadd.f32 %v237_v30, %v226_v23  ;;  %v239_v33 = vadd.f32 %v237_v30, %v227_v24  ;;  %v240_v34 = vadd.f32 %v237_v30, %v228_v25  ;;  %v241_v35 = vadd.f32 %v237_v30, %v229_v26 }
  0x2e   : > { %v242_v36 = vadd.f32 %v237_v30, %v230_v27  ;;  %v243_v37 = vadd.f32 %v237_v30, %v231_v28  ;;  %v244_v38 = vadd.f32 %v237_v30, %v232_v29  ;;  %v245_v39 = vadd.f32 %v237_v30, %v233_v31 }
  0x2f   : > { %v246_v40 = vmax.f32 %v238_v32, 0.0  ;;  %v247_v41 = vmax.f32 %v239_v33, 0.0  ;;  %v248_v42 = vmax.f32 %v240_v34, 0.0  ;;  %v249_v43 = vmax.f32 %v241_v35, 0.0 }
  0x30   : > { %v250_v44 = vmax.f32 %v242_v36, 0.0  ;;  %v251_v45 = vmax.f32 %v243_v37, 0.0  ;;  %v252_v46 = vmax.f32 %v244_v38, 0.0  ;;  %v253_v47 = vmax.f32 %v245_v39, 0.0 }
  0x31   : > { %254 = vst [vmem:[%s198_s23] sm:$0xff] %v246_v40  ;;  %255 = vst [vmem:[%s198_s23 + $0x8] sm:$0xff] %v247_v41 }
  0x32   : > { %256 = vst [vmem:[%s198_s23 + $0x10] sm:$0xff] %v248_v42  ;;  %257 = vst [vmem:[%s198_s23 + $0x18] sm:$0xff] %v249_v43 }
  0x33   : > { %258 = vst [vmem:[%s198_s23 + $0x20] sm:$0xff] %v250_v44  ;;  %259 = vst [vmem:[%s198_s23 + $0x28] sm:$0xff] %v251_v45 }
  0x34   : > { %260 = vst [vmem:[%s198_s23 + $0x30] sm:$0xff] %v252_v46  ;;  %261 = vst [vmem:[%s198_s23 + $0x38] sm:$0xff] %v253_v47 }
  0x35 PF: > { %s12_s11 = sadd.s32 1, %s423_s11   ;;  %s487_s9 = smov %s419_s10 }
  0x36   : > { %p9_p5 = scmp.ge.s32.totalorder %s12_s11, 4   ;;  %s488_s10 = smov %s490_s12 }
  0x38   :  { %11 = sbr.rel (!%p9_p5) target bundleno = 2 (0x2), region = 61 }

</bundles_post_ra>
